<compile_context>
chip_gen: v7x
topology: tpu7x:2x2x1
jax: 0.10.0
libtpu: 0.0.40
codegen_flags: <defaults>
</compile_context>

<pallas_src>
import functools

import jax
import jax.numpy as jnp
from jax import lax
from jax.experimental import pallas as pl
from jax.experimental.pallas import tpu as pltpu


# ----------------------------------------------------------------------------
# Fused kernel
# Grid: (num_steps,) over groups of `tasks_per_step` task matrices ("arbitrary")
# ----------------------------------------------------------------------------
def _fused_kernel(feat_ref,                       # [Bp, F] f32 (unique rows)
                  wm1, bm1, wm2, bm2,             # mean net   (pre-transposed)
                  wv1, bv1, wv2, bv2,             # logvar net (pre-transposed)
                  wl1, bl1, wl2, bl2,             # logit net  (pre-transposed)
                  eps_ref, gdiff_ref,             # [R, T] per-sample noise
                  task_ref,                       # [tasks_per_step, F, F] bf16
                  projT_ref,                      # [F, F] bf16 (already P.T)
                  out_ref,                        # [R, F] f32
                  coeff_sc, x_sc,                 # VMEM scratch: [R,T], [R,F]
                  *, tasks_per_step, num_samples, rows_per_sample,
                  inv_temperature, compute_dtype):
    j = pl.program_id(0)

    def mlp(x, w1, b1, w2, b2):
        h = jnp.maximum(
            jnp.dot(x, w1[...], preferred_element_type=jnp.float32) + b1[...],
            0.0)
        return jnp.dot(h, w2[...], preferred_element_type=jnp.float32) + b2[...]

    # ---- step 0: run the 3 MLPs on the unique rows, broadcast to samples ----
    @pl.when(j == 0)
    def _init():
        xb = feat_ref[...]                                          # [Bp, F]
        means = mlp(xb, wm1, bm1, wm2, bm2)
        logvars = jnp.clip(mlp(xb, wv1, bv1, wv2, bv2), -8.0, 2.0)
        logits = mlp(xb, wl1, bl1, wl2, bl2)
        std = jnp.exp(0.5 * logvars)
        for s in range(num_samples):                 # static unroll, static ds
            rs = pl.ds(s * rows_per_sample, rows_per_sample)
            gaussian = means + eps_ref[rs, :] * std
            binary = jax.nn.sigmoid((logits + gdiff_ref[rs, :]) * inv_temperature)
            coeff_sc[rs, :] = gaussian * binary
            x_sc[rs, :] = xb

    # ---- sequential task-vector composition (tasks_per_step per grid step) --
    coeff = coeff_sc[...]                                           # [R, T]
    lane = lax.broadcasted_iota(jnp.int32, coeff.shape, 1)
    x = x_sc[...]                                                   # [R, F] f32
    for t in range(tasks_per_step):
        g = j * tasks_per_step + t
        # coefficient column g via masked lane reduction (no dynamic lane slice)
        c = jnp.sum(jnp.where(lane == g, coeff, 0.0), axis=1, keepdims=True)
        # bf16 x bf16 -> f32 accumulate: native MXU path
        xm = jnp.dot(x.astype(compute_dtype), task_ref[t],
                     preferred_element_type=jnp.float32)
        x = x + c * xm                                              # f32 residual
    x_sc[...] = x

    # ---- last step: projection (out = x @ P.T, P.T passed pre-transposed) ---
    @pl.when(j == pl.num_programs(0) - 1)
    def _finalize():
        out = jnp.dot(x.astype(compute_dtype), projT_ref[...],
                      preferred_element_type=jnp.float32)
        out_ref[...] = out.astype(out_ref.dtype)


# ----------------------------------------------------------------------------
# Helpers
# ----------------------------------------------------------------------------
def _round_up(n, m):
    return ((n + m - 1) // m) * m


def _vmem_capacity_bytes():
    """Physical VMEM per TensorCore; conservative 64 MiB (v7x) fallback."""
    try:
        cap = int(pltpu.get_tpu_info().vmem_capacity_bytes)
        if cap > 0:
            return cap
    except Exception:
        pass
    return 64 * 1024 * 1024


def _choose_tasks_per_step(T, F, itemsize, budget_bytes):
    """Largest divisor of T whose task-matrix group fits the VMEM budget."""
    per_task = max(F * F * itemsize, 1)
    max_tk = max(1, budget_bytes // per_task)
    tk = 1
    for d in range(1, T + 1):
        if T % d == 0 and d <= max_tk:
            tk = d
    return tk


def _vmem_limit_bytes(Bp, R, F, H, T, tk, itemsize, vmem_cap):
    f32 = 4
    const_bytes = (Bp * F                               # features
                   + 3 * (F * H + H + H * T + T)        # MLP weights + biases
                   + 2 * R * T                          # eps, gdiff
                   + R * F) * f32                       # output
    scratch = (R * T + R * F) * f32
    task_stream = (2 * tk + 1) * F * F * itemsize       # 2x task bufs + proj
    est = 2 * (const_bytes + scratch) + task_stream + (4 << 20)
    # never request more than physical VMEM minus headroom (v7x: 64 MiB total)
    return int(min(max(est, 32 << 20), vmem_cap - (8 << 20)))


def _draw_noise(noise_key, num_samples, batch, num_task_vectors):
    """eps ~ N(0,1) and gumbel difference (g1 - g0), shapes [S, B, T]."""
    k_eps, k_u0, k_u1 = jax.random.split(noise_key, 3)
    shape = (num_samples, batch, num_task_vectors)
    eps = jax.random.normal(k_eps, shape, jnp.float32)
    u0 = jax.random.uniform(k_u0, shape, jnp.float32, 1e-10, 1.0)
    u1 = jax.random.uniform(k_u1, shape, jnp.float32, 1e-10, 1.0)
    gdiff = (-jnp.log(-jnp.log(u1))) - (-jnp.log(-jnp.log(u0)))
    return eps, gdiff


# ----------------------------------------------------------------------------
# Full forward pass (training mode, non-blockwise)
# ----------------------------------------------------------------------------
def spike_and_slab_metanet_forward(params, features, noise_key, *,
                                   temperature=0.1, num_samples=1,
                                   compute_dtype=jnp.bfloat16):
    # NOTE: task matrices / projection are streamed in `compute_dtype`
    # (default bf16, native MXU path).  Pass compute_dtype=jnp.float32 for
    # full-fidelity (2x HBM traffic, slower MXU passes).
    features = features.astype(jnp.float32)
    B, F = features.shape
    T = params["task_features"].shape[0]
    H = params["mean_net"]["w1"].shape[0]
    S = int(num_samples)

    # row padding: 8 sublanes for small batches, 128 when large (MXU-dense)
    Bp = _round_up(B, 128) if B >= 128 else _round_up(max(B, 8), 8)
    R = S * Bp

    # per-sample noise, padded per sample block and flattened sample-major
    eps, gdiff = _draw_noise(noise_key, S, B, T)          # [S, B, T]
    pad_b = Bp - B
    feat_p = jnp.pad(features, ((0, pad_b), (0, 0)))
    eps_p = jnp.pad(eps, ((0, 0), (0, pad_b), (0, 0))).reshape(R, T)
    gd_p = jnp.pad(gdiff, ((0, 0), (0, pad_b), (0, 0))).reshape(R, T)

    itemsize = jnp.dtype(compute_dtype).itemsize
    task = params["task_features"].astype(compute_dtype)          # [T, F, F]
    projT = params["projection"].T.astype(compute_dtype)          # P.T, [F, F]

    def net_args(p):   # pre-transpose in the wrapper: kernel does plain dots
        return (p["w1"].T.astype(jnp.float32),
                p["b1"].reshape(1, -1).astype(jnp.float32),
                p["w2"].T.astype(jnp.float32),
                p["b2"].reshape(1, -1).astype(jnp.float32))

    mn, lv, lg = params["mean_net"], params["logvar_net"], params["logit_net"]

    vmem_cap = _vmem_capacity_bytes()
    task_budget = max(2 << 20, min(12 << 20, vmem_cap // 5))
    tk = _choose_tasks_per_step(T, F, itemsize, task_budget)
    num_steps = T // tk
    vmem_limit = _vmem_limit_bytes(Bp, R, F, H, T, tk, itemsize, vmem_cap)

    kernel_fn = functools.partial(
        _fused_kernel,
        tasks_per_step=tk, num_samples=S, rows_per_sample=Bp,
        inv_temperature=float(1.0 / temperature), compute_dtype=compute_dtype)

    def build(single_buffer):
        def cspec(shape):
            if single_buffer:
                return pl.BlockSpec(shape, lambda j: (0,) * len(shape),
                                    pipeline_mode=pl.Buffered(1))
            return pl.BlockSpec(shape, lambda j: (0,) * len(shape))

        if single_buffer and num_steps == 1:
            # whole task tensor resident in one step -> no double buffer needed
            task_spec = pl.BlockSpec((tk, F, F), lambda j: (j, 0, 0),
                                     pipeline_mode=pl.Buffered(1))
        else:
            task_spec = pl.BlockSpec((tk, F, F), lambda j: (j, 0, 0))

        in_specs = [
            cspec((Bp, F)),                                            # feats
            cspec((F, H)), cspec((1, H)), cspec((H, T)), cspec((1, T)),  # mean
            cspec((F, H)), cspec((1, H)), cspec((H, T)), cspec((1, T)),  # logvar
            cspec((F, H)), cspec((1, H)), cspec((H, T)), cspec((1, T)),  # logit
            cspec((R, T)), cspec((R, T)),                              # eps, gd
            task_spec,                                                 # stream
            cspec((F, F)),                                             # projT
        ]
        return pl.pallas_call(
            kernel_fn,
            out_shape=jax.ShapeDtypeStruct((R, F), jnp.float32),
            grid=(num_steps,),
            in_specs=in_specs,
            out_specs=cspec((R, F)),
            scratch_shapes=[pltpu.VMEM((R, T), jnp.float32),
                            pltpu.VMEM((R, F), jnp.float32)],
            compiler_params=pltpu.CompilerParams(
                dimension_semantics=("arbitrary",),
                vmem_limit_bytes=vmem_limit),
        )

    args = (feat_p,
            *net_args(mn), *net_args(lv), *net_args(lg),
            eps_p, gd_p, task, projT)

    try:
        out = build(single_buffer=True)(*args)
        out = jax.block_until_ready(out)
    except Exception:
        # fallback: default (double-buffered) specs if pipeline_mode rejected
        out = build(single_buffer=False)(*args)

    out = out.reshape(S, Bp, F)[:, :B]
    return out.mean(axis=0) if S > 1 else out[0]


# ----------------------------------------------------------------------------
# Parameter construction (deterministic, mirrors __init__)
# ----------------------------------------------------------------------------
def init_params(key, feature_dim, num_task_vectors):
    T = num_task_vectors
    hidden_dim = max(feature_dim // 4, T)
    keys = jax.random.split(key, 13)

    def net_params(k0, k1, k2, k3):
        return dict(
            w1=0.01 * jax.random.normal(k0, (hidden_dim, feature_dim), jnp.float32),
            b1=0.01 * jax.random.normal(k1, (hidden_dim,), jnp.float32),
            w2=0.01 * jax.random.normal(k2, (T, hidden_dim), jnp.float32),
            b2=0.01 * jax.random.normal(k3, (T,), jnp.float32),
        )

    return dict(
        mean_net=net_params(*keys[0:4]),
        logvar_net=net_params(*keys[4:8]),
        logit_net=net_params(*keys[8:12]),
        task_features=0.01 * jax.random.normal(
            keys[12], (T, feature_dim, feature_dim), jnp.float32),
        projection=jnp.eye(feature_dim, dtype=jnp.float32),   # nn.init.eye_
    )


# ----------------------------------------------------------------------------
# Pure-JAX reference (mirrors the kernel's bf16-operand matmul dtype pipeline)
# ----------------------------------------------------------------------------
def _ref_forward(params, features, eps, gdiff, temperature,
                 compute_dtype=jnp.bfloat16):
    def mlp(p, x):
        h = jnp.maximum(x @ p["w1"].T + p["b1"], 0.0)
        return h @ p["w2"].T + p["b2"]

    x0 = features.astype(jnp.float32)
    means = mlp(params["mean_net"], x0)
    logvars = jnp.clip(mlp(params["logvar_net"], x0), -8.0, 2.0)
    logits = mlp(params["logit_net"], x0)
    task = params["task_features"].astype(compute_dtype).astype(jnp.float32)
    projT = params["projection"].T.astype(compute_dtype).astype(jnp.float32)

    outs = []
    for s in range(eps.shape[0]):
        gaussian = means + eps[s] * jnp.exp(0.5 * logvars)
        binary = jax.nn.sigmoid((logits + gdiff[s]) / temperature)
        coeffs = gaussian * binary
        x = x0
        for j in range(task.shape[0]):
            xb = x.astype(compute_dtype).astype(jnp.float32)
            x = x + coeffs[:, j:j + 1] * (xb @ task[j])
        outs.append(x.astype(compute_dtype).astype(jnp.float32) @ projT)
    return jnp.mean(jnp.stack(outs, 0), axis=0)


if __name__ == "__main__":
    feature_dim = 32
    num_task_vectors = 4
    batch = 2
    temperature = 0.1

    root = jax.random.PRNGKey(0)
    k_param, k_feat, k_noise = jax.random.split(root, 3)

    params = init_params(k_param, feature_dim, num_task_vectors)
    features = jax.random.normal(k_feat, (batch, feature_dim), jnp.float32)

    # --- single-sample path ---
    out = spike_and_slab_metanet_forward(
        params, features, k_noise, temperature=temperature, num_samples=1)
    out = jax.block_until_ready(out)
    assert out.shape == (batch, feature_dim)

    eps, gdiff = _draw_noise(k_noise, 1, batch, num_task_vectors)
    ref = _ref_forward(params, features, eps, gdiff, temperature)
    assert jnp.allclose(out, ref, atol=2e-3, rtol=2e-3), "mismatch vs ref (S=1)"

    # --- multi-sample path (MLPs run once on unique rows, mean over samples) ---
    out3 = spike_and_slab_metanet_forward(
        params, features, k_noise, temperature=temperature, num_samples=3)
    out3 = jax.block_until_ready(out3)
    eps3, gd3 = _draw_noise(k_noise, 3, batch, num_task_vectors)
    ref3 = _ref_forward(params, features, eps3, gd3, temperature)
    assert out3.shape == (batch, feature_dim)
    assert jnp.allclose(out3, ref3, atol=2e-3, rtol=2e-3), "mismatch vs ref (S=3)"

    print("KERNEL_OK")
</pallas_src>

<mosaic_0001>
module attributes {stable_mosaic.version = 11 : i64} {
  func.func @_fused_kernel(%arg0: i32, %arg1: memref<8x32xf32, #tpu.memory_space<vmem>>, %arg2: memref<32x8xf32, #tpu.memory_space<vmem>>, %arg3: memref<1x8xf32, #tpu.memory_space<vmem>>, %arg4: memref<8x4xf32, #tpu.memory_space<vmem>>, %arg5: memref<1x4xf32, #tpu.memory_space<vmem>>, %arg6: memref<32x8xf32, #tpu.memory_space<vmem>>, %arg7: memref<1x8xf32, #tpu.memory_space<vmem>>, %arg8: memref<8x4xf32, #tpu.memory_space<vmem>>, %arg9: memref<1x4xf32, #tpu.memory_space<vmem>>, %arg10: memref<32x8xf32, #tpu.memory_space<vmem>>, %arg11: memref<1x8xf32, #tpu.memory_space<vmem>>, %arg12: memref<8x4xf32, #tpu.memory_space<vmem>>, %arg13: memref<1x4xf32, #tpu.memory_space<vmem>>, %arg14: memref<8x4xf32, #tpu.memory_space<vmem>>, %arg15: memref<8x4xf32, #tpu.memory_space<vmem>>, %arg16: memref<4x32x32xbf16, #tpu.memory_space<vmem>>, %arg17: memref<32x32xbf16, #tpu.memory_space<vmem>>, %arg18: memref<8x32xf32, #tpu.memory_space<vmem>>, %arg19: memref<8x4xf32, #tpu.memory_space<vmem>>, %arg20: memref<8x32xf32, #tpu.memory_space<vmem>>) attributes {dimension_semantics = [#tpu.dimension_semantics<arbitrary>], iteration_bounds = array<i64: 1>, scalar_prefetch = 0 : i64, scratch_operands = 2 : i64, tpu.core_type = #tpu.core_type<tc>, window_params = [{pipeline_mode = #tpu.pipeline_mode<synchronous>, transform_indices = @transform_0, window_bounds = array<i64: 8, 32>}, {pipeline_mode = #tpu.pipeline_mode<synchronous>, transform_indices = @transform_1, window_bounds = array<i64: 32, 8>}, {pipeline_mode = #tpu.pipeline_mode<synchronous>, transform_indices = @transform_2, window_bounds = array<i64: 1, 8>}, {pipeline_mode = #tpu.pipeline_mode<synchronous>, transform_indices = @transform_3, window_bounds = array<i64: 8, 4>}, {pipeline_mode = #tpu.pipeline_mode<synchronous>, transform_indices = @transform_4, window_bounds = array<i64: 1, 4>}, {pipeline_mode = #tpu.pipeline_mode<synchronous>, transform_indices = @transform_5, window_bounds = array<i64: 32, 8>}, {pipeline_mode = #tpu.pipeline_mode<synchronous>, transform_indices = @transform_6, window_bounds = array<i64: 1, 8>}, {pipeline_mode = #tpu.pipeline_mode<synchronous>, transform_indices = @transform_7, window_bounds = array<i64: 8, 4>}, {pipeline_mode = #tpu.pipeline_mode<synchronous>, transform_indices = @transform_8, window_bounds = array<i64: 1, 4>}, {pipeline_mode = #tpu.pipeline_mode<synchronous>, transform_indices = @transform_9, window_bounds = array<i64: 32, 8>}, {pipeline_mode = #tpu.pipeline_mode<synchronous>, transform_indices = @transform_10, window_bounds = array<i64: 1, 8>}, {pipeline_mode = #tpu.pipeline_mode<synchronous>, transform_indices = @transform_11, window_bounds = array<i64: 8, 4>}, {pipeline_mode = #tpu.pipeline_mode<synchronous>, transform_indices = @transform_12, window_bounds = array<i64: 1, 4>}, {pipeline_mode = #tpu.pipeline_mode<synchronous>, transform_indices = @transform_13, window_bounds = array<i64: 8, 4>}, {pipeline_mode = #tpu.pipeline_mode<synchronous>, transform_indices = @transform_14, window_bounds = array<i64: 8, 4>}, {pipeline_mode = #tpu.pipeline_mode<synchronous>, transform_indices = @transform_15, window_bounds = array<i64: 4, 32, 32>}, {pipeline_mode = #tpu.pipeline_mode<synchronous>, transform_indices = @transform_16, window_bounds = array<i64: 32, 32>}, {pipeline_mode = #tpu.pipeline_mode<synchronous>, transform_indices = @transform_17, window_bounds = array<i64: 8, 32>}]} {
    %c0_i32 = arith.constant 0 : i32
    %0 = arith.cmpi eq, %arg0, %c0_i32 : i32
    %1 = arith.extui %0 : i1 to i32
    %c0_i32_0 = arith.constant 0 : i32
    %2 = arith.cmpi ne, %1, %c0_i32_0 : i32
    scf.if %2 {
      %c0_32 = arith.constant 0 : index
      %c0_33 = arith.constant 0 : index
      %70 = vector.load %arg1[%c0_32, %c0_33] : memref<8x32xf32, #tpu.memory_space<vmem>>, vector<8x32xf32>
      %c0_34 = arith.constant 0 : index
      %c0_35 = arith.constant 0 : index
      %71 = vector.load %arg2[%c0_34, %c0_35] : memref<32x8xf32, #tpu.memory_space<vmem>>, vector<32x8xf32>
      %cst_36 = arith.constant dense<0.000000e+00> : vector<8x8xf32>
      %72 = tpu.matmul %70, %71, %cst_36 {dimension_numbers = #tpu.dot_dimension_numbers<[1], [0], [0], [1], [0, 0, 1, 1], [], []>} : vector<8x32xf32>, vector<32x8xf32>, vector<8x8xf32> -> vector<8x8xf32>
      %c0_37 = arith.constant 0 : index
      %c0_38 = arith.constant 0 : index
      %73 = vector.load %arg3[%c0_37, %c0_38] : memref<1x8xf32, #tpu.memory_space<vmem>>, vector<1x8xf32>
      %74 = vector.broadcast %73 : vector<1x8xf32> to vector<8x8xf32>
      %75 = arith.addf %72, %74 : vector<8x8xf32>
      %cst_39 = arith.constant 0.000000e+00 : f32
      %76 = vector.broadcast %cst_39 : f32 to vector<8x8xf32>
      %77 = arith.maximumf %75, %76 : vector<8x8xf32>
      %c0_40 = arith.constant 0 : index
      %c0_41 = arith.constant 0 : index
      %78 = vector.load %arg4[%c0_40, %c0_41] : memref<8x4xf32, #tpu.memory_space<vmem>>, vector<8x4xf32>
      %cst_42 = arith.constant dense<0.000000e+00> : vector<8x4xf32>
      %79 = tpu.matmul %77, %78, %cst_42 {dimension_numbers = #tpu.dot_dimension_numbers<[1], [0], [0], [1], [0, 0, 1, 1], [], []>} : vector<8x8xf32>, vector<8x4xf32>, vector<8x4xf32> -> vector<8x4xf32>
      %c0_43 = arith.constant 0 : index
      %c0_44 = arith.constant 0 : index
      %80 = vector.load %arg5[%c0_43, %c0_44] : memref<1x4xf32, #tpu.memory_space<vmem>>, vector<1x4xf32>
      %81 = vector.broadcast %80 : vector<1x4xf32> to vector<8x4xf32>
      %82 = arith.addf %79, %81 : vector<8x4xf32>
      %c0_45 = arith.constant 0 : index
      %c0_46 = arith.constant 0 : index
      %83 = vector.load %arg6[%c0_45, %c0_46] : memref<32x8xf32, #tpu.memory_space<vmem>>, vector<32x8xf32>
      %cst_47 = arith.constant dense<0.000000e+00> : vector<8x8xf32>
      %84 = tpu.matmul %70, %83, %cst_47 {dimension_numbers = #tpu.dot_dimension_numbers<[1], [0], [0], [1], [0, 0, 1, 1], [], []>} : vector<8x32xf32>, vector<32x8xf32>, vector<8x8xf32> -> vector<8x8xf32>
      %c0_48 = arith.constant 0 : index
      %c0_49 = arith.constant 0 : index
      %85 = vector.load %arg7[%c0_48, %c0_49] : memref<1x8xf32, #tpu.memory_space<vmem>>, vector<1x8xf32>
      %86 = vector.broadcast %85 : vector<1x8xf32> to vector<8x8xf32>
      %87 = arith.addf %84, %86 : vector<8x8xf32>
      %cst_50 = arith.constant 0.000000e+00 : f32
      %88 = vector.broadcast %cst_50 : f32 to vector<8x8xf32>
      %89 = arith.maximumf %87, %88 : vector<8x8xf32>
      %c0_51 = arith.constant 0 : index
      %c0_52 = arith.constant 0 : index
      %90 = vector.load %arg8[%c0_51, %c0_52] : memref<8x4xf32, #tpu.memory_space<vmem>>, vector<8x4xf32>
      %cst_53 = arith.constant dense<0.000000e+00> : vector<8x4xf32>
      %91 = tpu.matmul %89, %90, %cst_53 {dimension_numbers = #tpu.dot_dimension_numbers<[1], [0], [0], [1], [0, 0, 1, 1], [], []>} : vector<8x8xf32>, vector<8x4xf32>, vector<8x4xf32> -> vector<8x4xf32>
      %c0_54 = arith.constant 0 : index
      %c0_55 = arith.constant 0 : index
      %92 = vector.load %arg9[%c0_54, %c0_55] : memref<1x4xf32, #tpu.memory_space<vmem>>, vector<1x4xf32>
      %93 = vector.broadcast %92 : vector<1x4xf32> to vector<8x4xf32>
      %94 = arith.addf %91, %93 : vector<8x4xf32>
      %cst_56 = arith.constant -8.000000e+00 : f32
      %cst_57 = arith.constant 2.000000e+00 : f32
      %95 = vector.broadcast %cst_56 : f32 to vector<8x4xf32>
      %96 = arith.maximumf %95, %94 : vector<8x4xf32>
      %97 = vector.broadcast %cst_57 : f32 to vector<8x4xf32>
      %98 = arith.minimumf %97, %96 : vector<8x4xf32>
      %c0_58 = arith.constant 0 : index
      %c0_59 = arith.constant 0 : index
      %99 = vector.load %arg10[%c0_58, %c0_59] : memref<32x8xf32, #tpu.memory_space<vmem>>, vector<32x8xf32>
      %cst_60 = arith.constant dense<0.000000e+00> : vector<8x8xf32>
      %100 = tpu.matmul %70, %99, %cst_60 {dimension_numbers = #tpu.dot_dimension_numbers<[1], [0], [0], [1], [0, 0, 1, 1], [], []>} : vector<8x32xf32>, vector<32x8xf32>, vector<8x8xf32> -> vector<8x8xf32>
      %c0_61 = arith.constant 0 : index
      %c0_62 = arith.constant 0 : index
      %101 = vector.load %arg11[%c0_61, %c0_62] : memref<1x8xf32, #tpu.memory_space<vmem>>, vector<1x8xf32>
      %102 = vector.broadcast %101 : vector<1x8xf32> to vector<8x8xf32>
      %103 = arith.addf %100, %102 : vector<8x8xf32>
      %cst_63 = arith.constant 0.000000e+00 : f32
      %104 = vector.broadcast %cst_63 : f32 to vector<8x8xf32>
      %105 = arith.maximumf %103, %104 : vector<8x8xf32>
      %c0_64 = arith.constant 0 : index
      %c0_65 = arith.constant 0 : index
      %106 = vector.load %arg12[%c0_64, %c0_65] : memref<8x4xf32, #tpu.memory_space<vmem>>, vector<8x4xf32>
      %cst_66 = arith.constant dense<0.000000e+00> : vector<8x4xf32>
      %107 = tpu.matmul %105, %106, %cst_66 {dimension_numbers = #tpu.dot_dimension_numbers<[1], [0], [0], [1], [0, 0, 1, 1], [], []>} : vector<8x8xf32>, vector<8x4xf32>, vector<8x4xf32> -> vector<8x4xf32>
      %c0_67 = arith.constant 0 : index
      %c0_68 = arith.constant 0 : index
      %108 = vector.load %arg13[%c0_67, %c0_68] : memref<1x4xf32, #tpu.memory_space<vmem>>, vector<1x4xf32>
      %109 = vector.broadcast %108 : vector<1x4xf32> to vector<8x4xf32>
      %110 = arith.addf %107, %109 : vector<8x4xf32>
      %cst_69 = arith.constant 5.000000e-01 : f32
      %111 = vector.broadcast %cst_69 : f32 to vector<8x4xf32>
      %112 = arith.mulf %111, %98 : vector<8x4xf32>
      %113 = math.exp %112 : vector<8x4xf32>
      %c0_70 = arith.constant 0 : index
      %c0_71 = arith.constant 0 : index
      %114 = vector.load %arg14[%c0_70, %c0_71] : memref<8x4xf32, #tpu.memory_space<vmem>>, vector<8x4xf32>
      %115 = arith.mulf %114, %113 : vector<8x4xf32>
      %116 = arith.addf %82, %115 : vector<8x4xf32>
      %c0_72 = arith.constant 0 : index
      %c0_73 = arith.constant 0 : index
      %117 = vector.load %arg15[%c0_72, %c0_73] : memref<8x4xf32, #tpu.memory_space<vmem>>, vector<8x4xf32>
      %118 = arith.addf %110, %117 : vector<8x4xf32>
      %cst_74 = arith.constant 1.000000e+01 : f32
      %119 = vector.broadcast %cst_74 : f32 to vector<8x4xf32>
      %120 = arith.mulf %118, %119 : vector<8x4xf32>
      %121 = arith.negf %120 : vector<8x4xf32>
      %122 = math.exp %121 : vector<8x4xf32>
      %cst_75 = arith.constant 1.000000e+00 : f32
      %123 = vector.broadcast %cst_75 : f32 to vector<8x4xf32>
      %124 = arith.addf %123, %122 : vector<8x4xf32>
      %125 = arith.divf %123, %124 : vector<8x4xf32>
      %126 = arith.mulf %116, %125 : vector<8x4xf32>
      %c0_76 = arith.constant 0 : index
      %c0_77 = arith.constant 0 : index
      %127 = vector.load %arg19[%c0_76, %c0_77] : memref<8x4xf32, #tpu.memory_space<vmem>>, vector<8x4xf32>
      tpu.vector_store %arg19[%c0_76, %c0_77], %126 {strides = array<i32>} : memref<8x4xf32, #tpu.memory_space<vmem>>, vector<8x4xf32>,
      %c0_78 = arith.constant 0 : index
      %c0_79 = arith.constant 0 : index
      %128 = vector.load %arg20[%c0_78, %c0_79] : memref<8x32xf32, #tpu.memory_space<vmem>>, vector<8x32xf32>
      tpu.vector_store %arg20[%c0_78, %c0_79], %70 {strides = array<i32>} : memref<8x32xf32, #tpu.memory_space<vmem>>, vector<8x32xf32>,
    } else {
    }
    %c0 = arith.constant 0 : index
    %c0_1 = arith.constant 0 : index
    %3 = vector.load %arg19[%c0, %c0_1] : memref<8x4xf32, #tpu.memory_space<vmem>>, vector<8x4xf32>
    %4 = tpu.iota {dimensions = array<i32: 1>} : vector<8x4xi32>
    %c0_2 = arith.constant 0 : index
    %c0_3 = arith.constant 0 : index
    %5 = vector.load %arg20[%c0_2, %c0_3] : memref<8x32xf32, #tpu.memory_space<vmem>>, vector<8x32xf32>
    %c4_i32 = arith.constant 4 : i32
    %6 = arith.muli %arg0, %c4_i32 : i32
    %c0_i32_4 = arith.constant 0 : i32
    %7 = arith.addi %6, %c0_i32_4 : i32
    %8 = vector.broadcast %7 : i32 to vector<8x4xi32>
    %9 = arith.cmpi eq, %4, %8 : vector<8x4xi32>
    %cst = arith.constant 0.000000e+00 : f32
    %10 = vector.broadcast %cst : f32 to vector<8x4xf32>
    %11 = arith.select %9, %3, %10 : vector<8x4xi1>, vector<8x4xf32>
    %cst_5 = arith.constant dense<0.000000e+00> : vector<8xf32>
    %12 = vector.multi_reduction <add>, %11, %cst_5 [1] : vector<8x4xf32> to vector<8xf32>
    %13 = vector.shape_cast %12 : vector<8xf32> to vector<8x1xf32>
    %14 = arith.truncf %5 : vector<8x32xf32> to vector<8x32xbf16>
    %c0_6 = arith.constant 0 : index
    %c0_7 = arith.constant 0 : index
    %c0_8 = arith.constant 0 : index
    %15 = vector.load %arg16[%c0_6, %c0_7, %c0_8] : memref<4x32x32xbf16, #tpu.memory_space<vmem>>, vector<1x32x32xbf16>
    %16 = vector.shape_cast %15 : vector<1x32x32xbf16> to vector<32x32xbf16>
    %cst_9 = arith.constant dense<0.000000e+00> : vector<8x32xf32>
    %17 = tpu.matmul %14, %16, %cst_9 {dimension_numbers = #tpu.dot_dimension_numbers<[1], [0], [0], [1], [0, 0, 1, 1], [], []>} : vector<8x32xbf16>, vector<32x32xbf16>, vector<8x32xf32> -> vector<8x32xf32>
    %18 = vector.broadcast %13 : vector<8x1xf32> to vector<8x32xf32>
    %19 = arith.mulf %18, %17 : vector<8x32xf32>
    %20 = arith.addf %5, %19 : vector<8x32xf32>
    %c4_i32_10 = arith.constant 4 : i32
    %21 = arith.muli %arg0, %c4_i32_10 : i32
    %c1_i32 = arith.constant 1 : i32
    %22 = arith.addi %21, %c1_i32 : i32
    %23 = vector.broadcast %22 : i32 to vector<8x4xi32>
    %24 = arith.cmpi eq, %4, %23 : vector<8x4xi32>
    %cst_11 = arith.constant 0.000000e+00 : f32
    %25 = vector.broadcast %cst_11 : f32 to vector<8x4xf32>
    %26 = arith.select %24, %3, %25 : vector<8x4xi1>, vector<8x4xf32>
    %cst_12 = arith.constant dense<0.000000e+00> : vector<8xf32>
    %27 = vector.multi_reduction <add>, %26, %cst_12 [1] : vector<8x4xf32> to vector<8xf32>
    %28 = vector.shape_cast %27 : vector<8xf32> to vector<8x1xf32>
    %29 = arith.truncf %20 : vector<8x32xf32> to vector<8x32xbf16>
    %c1 = arith.constant 1 : index
    %c0_13 = arith.constant 0 : index
    %c0_14 = arith.constant 0 : index
    %30 = vector.load %arg16[%c1, %c0_13, %c0_14] : memref<4x32x32xbf16, #tpu.memory_space<vmem>>, vector<1x32x32xbf16>
    %31 = vector.shape_cast %30 : vector<1x32x32xbf16> to vector<32x32xbf16>
    %cst_15 = arith.constant dense<0.000000e+00> : vector<8x32xf32>
    %32 = tpu.matmul %29, %31, %cst_15 {dimension_numbers = #tpu.dot_dimension_numbers<[1], [0], [0], [1], [0, 0, 1, 1], [], []>} : vector<8x32xbf16>, vector<32x32xbf16>, vector<8x32xf32> -> vector<8x32xf32>
    %33 = vector.broadcast %28 : vector<8x1xf32> to vector<8x32xf32>
    %34 = arith.mulf %33, %32 : vector<8x32xf32>
    %35 = arith.addf %20, %34 : vector<8x32xf32>
    %c4_i32_16 = arith.constant 4 : i32
    %36 = arith.muli %arg0, %c4_i32_16 : i32
    %c2_i32 = arith.constant 2 : i32
    %37 = arith.addi %36, %c2_i32 : i32
    %38 = vector.broadcast %37 : i32 to vector<8x4xi32>
    %39 = arith.cmpi eq, %4, %38 : vector<8x4xi32>
    %cst_17 = arith.constant 0.000000e+00 : f32
    %40 = vector.broadcast %cst_17 : f32 to vector<8x4xf32>
    %41 = arith.select %39, %3, %40 : vector<8x4xi1>, vector<8x4xf32>
    %cst_18 = arith.constant dense<0.000000e+00> : vector<8xf32>
    %42 = vector.multi_reduction <add>, %41, %cst_18 [1] : vector<8x4xf32> to vector<8xf32>
    %43 = vector.shape_cast %42 : vector<8xf32> to vector<8x1xf32>
    %44 = arith.truncf %35 : vector<8x32xf32> to vector<8x32xbf16>
    %c2 = arith.constant 2 : index
    %c0_19 = arith.constant 0 : index
    %c0_20 = arith.constant 0 : index
    %45 = vector.load %arg16[%c2, %c0_19, %c0_20] : memref<4x32x32xbf16, #tpu.memory_space<vmem>>, vector<1x32x32xbf16>
    %46 = vector.shape_cast %45 : vector<1x32x32xbf16> to vector<32x32xbf16>
    %cst_21 = arith.constant dense<0.000000e+00> : vector<8x32xf32>
    %47 = tpu.matmul %44, %46, %cst_21 {dimension_numbers = #tpu.dot_dimension_numbers<[1], [0], [0], [1], [0, 0, 1, 1], [], []>} : vector<8x32xbf16>, vector<32x32xbf16>, vector<8x32xf32> -> vector<8x32xf32>
    %48 = vector.broadcast %43 : vector<8x1xf32> to vector<8x32xf32>
    %49 = arith.mulf %48, %47 : vector<8x32xf32>
    %50 = arith.addf %35, %49 : vector<8x32xf32>
    %c4_i32_22 = arith.constant 4 : i32
    %51 = arith.muli %arg0, %c4_i32_22 : i32
    %c3_i32 = arith.constant 3 : i32
    %52 = arith.addi %51, %c3_i32 : i32
    %53 = vector.broadcast %52 : i32 to vector<8x4xi32>
    %54 = arith.cmpi eq, %4, %53 : vector<8x4xi32>
    %cst_23 = arith.constant 0.000000e+00 : f32
    %55 = vector.broadcast %cst_23 : f32 to vector<8x4xf32>
    %56 = arith.select %54, %3, %55 : vector<8x4xi1>, vector<8x4xf32>
    %cst_24 = arith.constant dense<0.000000e+00> : vector<8xf32>
    %57 = vector.multi_reduction <add>, %56, %cst_24 [1] : vector<8x4xf32> to vector<8xf32>
    %58 = vector.shape_cast %57 : vector<8xf32> to vector<8x1xf32>
    %59 = arith.truncf %50 : vector<8x32xf32> to vector<8x32xbf16>
    %c3 = arith.constant 3 : index
    %c0_25 = arith.constant 0 : index
    %c0_26 = arith.constant 0 : index
    %60 = vector.load %arg16[%c3, %c0_25, %c0_26] : memref<4x32x32xbf16, #tpu.memory_space<vmem>>, vector<1x32x32xbf16>
    %61 = vector.shape_cast %60 : vector<1x32x32xbf16> to vector<32x32xbf16>
    %cst_27 = arith.constant dense<0.000000e+00> : vector<8x32xf32>
    %62 = tpu.matmul %59, %61, %cst_27 {dimension_numbers = #tpu.dot_dimension_numbers<[1], [0], [0], [1], [0, 0, 1, 1], [], []>} : vector<8x32xbf16>, vector<32x32xbf16>, vector<8x32xf32> -> vector<8x32xf32>
    %63 = vector.broadcast %58 : vector<8x1xf32> to vector<8x32xf32>
    %64 = arith.mulf %63, %62 : vector<8x32xf32>
    %65 = arith.addf %50, %64 : vector<8x32xf32>
    %c0_28 = arith.constant 0 : index
    %c0_29 = arith.constant 0 : index
    %66 = vector.load %arg20[%c0_28, %c0_29] : memref<8x32xf32, #tpu.memory_space<vmem>>, vector<8x32xf32>
    tpu.vector_store %arg20[%c0_28, %c0_29], %65 {strides = array<i32>} : memref<8x32xf32, #tpu.memory_space<vmem>>, vector<8x32xf32>,
    %c0_i32_30 = arith.constant 0 : i32
    %67 = arith.cmpi eq, %arg0, %c0_i32_30 : i32
    %68 = arith.extui %67 : i1 to i32
    %c0_i32_31 = arith.constant 0 : i32
    %69 = arith.cmpi ne, %68, %c0_i32_31 : i32
    scf.if %69 {
      %70 = arith.truncf %65 : vector<8x32xf32> to vector<8x32xbf16>
      %c0_32 = arith.constant 0 : index
      %c0_33 = arith.constant 0 : index
      %71 = vector.load %arg17[%c0_32, %c0_33] : memref<32x32xbf16, #tpu.memory_space<vmem>>, vector<32x32xbf16>
      %cst_34 = arith.constant dense<0.000000e+00> : vector<8x32xf32>
      %72 = tpu.matmul %70, %71, %cst_34 {dimension_numbers = #tpu.dot_dimension_numbers<[1], [0], [0], [1], [0, 0, 1, 1], [], []>} : vector<8x32xbf16>, vector<32x32xbf16>, vector<8x32xf32> -> vector<8x32xf32>
      %c0_35 = arith.constant 0 : index
      %c0_36 = arith.constant 0 : index
      %73 = vector.load %arg18[%c0_35, %c0_36] : memref<8x32xf32, #tpu.memory_space<vmem>>, vector<8x32xf32>
      tpu.vector_store %arg18[%c0_35, %c0_36], %72 {strides = array<i32>} : memref<8x32xf32, #tpu.memory_space<vmem>>, vector<8x32xf32>,
    } else {
    }
    return
  }
  func.func @transform_0(%arg0: i32) -> (i32, i32) {
    %c0_i32 = arith.constant 0 : i32
    %c0_i32_0 = arith.constant 0 : i32
    %c0_i32_1 = arith.constant 0 : i32
    return %c0_i32, %c0_i32_0 : i32, i32
  }
  func.func @transform_1(%arg0: i32) -> (i32, i32) {
    %c0_i32 = arith.constant 0 : i32
    %c0_i32_0 = arith.constant 0 : i32
    %c0_i32_1 = arith.constant 0 : i32
    return %c0_i32, %c0_i32_0 : i32, i32
  }
  func.func @transform_2(%arg0: i32) -> (i32, i32) {
    %c0_i32 = arith.constant 0 : i32
    %c0_i32_0 = arith.constant 0 : i32
    %c0_i32_1 = arith.constant 0 : i32
    return %c0_i32, %c0_i32_0 : i32, i32
  }
  func.func @transform_3(%arg0: i32) -> (i32, i32) {
    %c0_i32 = arith.constant 0 : i32
    %c0_i32_0 = arith.constant 0 : i32
    %c0_i32_1 = arith.constant 0 : i32
    return %c0_i32, %c0_i32_0 : i32, i32
  }
  func.func @transform_4(%arg0: i32) -> (i32, i32) {
    %c0_i32 = arith.constant 0 : i32
    %c0_i32_0 = arith.constant 0 : i32
    %c0_i32_1 = arith.constant 0 : i32
    return %c0_i32, %c0_i32_0 : i32, i32
  }
  func.func @transform_5(%arg0: i32) -> (i32, i32) {
    %c0_i32 = arith.constant 0 : i32
    %c0_i32_0 = arith.constant 0 : i32
    %c0_i32_1 = arith.constant 0 : i32
    return %c0_i32, %c0_i32_0 : i32, i32
  }
  func.func @transform_6(%arg0: i32) -> (i32, i32) {
    %c0_i32 = arith.constant 0 : i32
    %c0_i32_0 = arith.constant 0 : i32
    %c0_i32_1 = arith.constant 0 : i32
    return %c0_i32, %c0_i32_0 : i32, i32
  }
  func.func @transform_7(%arg0: i32) -> (i32, i32) {
    %c0_i32 = arith.constant 0 : i32
    %c0_i32_0 = arith.constant 0 : i32
    %c0_i32_1 = arith.constant 0 : i32
    return %c0_i32, %c0_i32_0 : i32, i32
  }
  func.func @transform_8(%arg0: i32) -> (i32, i32) {
    %c0_i32 = arith.constant 0 : i32
    %c0_i32_0 = arith.constant 0 : i32
    %c0_i32_1 = arith.constant 0 : i32
    return %c0_i32, %c0_i32_0 : i32, i32
  }
  func.func @transform_9(%arg0: i32) -> (i32, i32) {
    %c0_i32 = arith.constant 0 : i32
    %c0_i32_0 = arith.constant 0 : i32
    %c0_i32_1 = arith.constant 0 : i32
    return %c0_i32, %c0_i32_0 : i32, i32
  }
  func.func @transform_10(%arg0: i32) -> (i32, i32) {
    %c0_i32 = arith.constant 0 : i32
    %c0_i32_0 = arith.constant 0 : i32
    %c0_i32_1 = arith.constant 0 : i32
    return %c0_i32, %c0_i32_0 : i32, i32
  }
  func.func @transform_11(%arg0: i32) -> (i32, i32) {
    %c0_i32 = arith.constant 0 : i32
    %c0_i32_0 = arith.constant 0 : i32
    %c0_i32_1 = arith.constant 0 : i32
    return %c0_i32, %c0_i32_0 : i32, i32
  }
  func.func @transform_12(%arg0: i32) -> (i32, i32) {
    %c0_i32 = arith.constant 0 : i32
    %c0_i32_0 = arith.constant 0 : i32
    %c0_i32_1 = arith.constant 0 : i32
    return %c0_i32, %c0_i32_0 : i32, i32
  }
  func.func @transform_13(%arg0: i32) -> (i32, i32) {
    %c0_i32 = arith.constant 0 : i32
    %c0_i32_0 = arith.constant 0 : i32
    %c0_i32_1 = arith.constant 0 : i32
    return %c0_i32, %c0_i32_0 : i32, i32
  }
  func.func @transform_14(%arg0: i32) -> (i32, i32) {
    %c0_i32 = arith.constant 0 : i32
    %c0_i32_0 = arith.constant 0 : i32
    %c0_i32_1 = arith.constant 0 : i32
    return %c0_i32, %c0_i32_0 : i32, i32
  }
  func.func @transform_15(%arg0: i32) -> (i32, i32, i32) {
    %c0_i32 = arith.constant 0 : i32
    %c0_i32_0 = arith.constant 0 : i32
    %c0_i32_1 = arith.constant 0 : i32
    return %arg0, %c0_i32, %c0_i32_0 : i32, i32, i32
  }
  func.func @transform_16(%arg0: i32) -> (i32, i32) {
    %c0_i32 = arith.constant 0 : i32
    %c0_i32_0 = arith.constant 0 : i32
    %c0_i32_1 = arith.constant 0 : i32
    return %c0_i32, %c0_i32_0 : i32, i32
  }
  func.func @transform_17(%arg0: i32) -> (i32, i32) {
    %c0_i32 = arith.constant 0 : i32
    %c0_i32_0 = arith.constant 0 : i32
    %c0_i32_1 = arith.constant 0 : i32
    return %c0_i32, %c0_i32_0 : i32, i32
  }
}

module attributes {stable_mosaic.version = 11 : i64} {
  func.func @_fused_kernel(%arg0: i32, %arg1: memref<8x32xf32, #tpu.memory_space<vmem>>, %arg2: memref<32x8xf32, #tpu.memory_space<vmem>>, %arg3: memref<1x8xf32, #tpu.memory_space<vmem>>, %arg4: memref<8x4xf32, #tpu.memory_space<vmem>>, %arg5: memref<1x4xf32, #tpu.memory_space<vmem>>, %arg6: memref<32x8xf32, #tpu.memory_space<vmem>>, %arg7: memref<1x8xf32, #tpu.memory_space<vmem>>, %arg8: memref<8x4xf32, #tpu.memory_space<vmem>>, %arg9: memref<1x4xf32, #tpu.memory_space<vmem>>, %arg10: memref<32x8xf32, #tpu.memory_space<vmem>>, %arg11: memref<1x8xf32, #tpu.memory_space<vmem>>, %arg12: memref<8x4xf32, #tpu.memory_space<vmem>>, %arg13: memref<1x4xf32, #tpu.memory_space<vmem>>, %arg14: memref<8x4xf32, #tpu.memory_space<vmem>>, %arg15: memref<8x4xf32, #tpu.memory_space<vmem>>, %arg16: memref<4x32x32xbf16, #tpu.memory_space<vmem>>, %arg17: memref<32x32xbf16, #tpu.memory_space<vmem>>, %arg18: memref<8x32xf32, #tpu.memory_space<vmem>>, %arg19: memref<8x4xf32, #tpu.memory_space<vmem>>, %arg20: memref<8x32xf32, #tpu.memory_space<vmem>>) attributes {dimension_semantics = [#tpu.dimension_semantics<arbitrary>], iteration_bounds = array<i64: 1>, scalar_prefetch = 0 : i64, scratch_operands = 2 : i64, tpu.core_type = #tpu.core_type<tc>, window_params = [{pipeline_mode = #tpu.pipeline_mode<synchronous>, transform_indices = @transform_0, window_bounds = array<i64: 8, 32>}, {pipeline_mode = #tpu.pipeline_mode<synchronous>, transform_indices = @transform_1, window_bounds = array<i64: 32, 8>}, {pipeline_mode = #tpu.pipeline_mode<synchronous>, transform_indices = @transform_2, window_bounds = array<i64: 1, 8>}, {pipeline_mode = #tpu.pipeline_mode<synchronous>, transform_indices = @transform_3, window_bounds = array<i64: 8, 4>}, {pipeline_mode = #tpu.pipeline_mode<synchronous>, transform_indices = @transform_4, window_bounds = array<i64: 1, 4>}, {pipeline_mode = #tpu.pipeline_mode<synchronous>, transform_indices = @transform_5, window_bounds = array<i64: 32, 8>}, {pipeline_mode = #tpu.pipeline_mode<synchronous>, transform_indices = @transform_6, window_bounds = array<i64: 1, 8>}, {pipeline_mode = #tpu.pipeline_mode<synchronous>, transform_indices = @transform_7, window_bounds = array<i64: 8, 4>}, {pipeline_mode = #tpu.pipeline_mode<synchronous>, transform_indices = @transform_8, window_bounds = array<i64: 1, 4>}, {pipeline_mode = #tpu.pipeline_mode<synchronous>, transform_indices = @transform_9, window_bounds = array<i64: 32, 8>}, {pipeline_mode = #tpu.pipeline_mode<synchronous>, transform_indices = @transform_10, window_bounds = array<i64: 1, 8>}, {pipeline_mode = #tpu.pipeline_mode<synchronous>, transform_indices = @transform_11, window_bounds = array<i64: 8, 4>}, {pipeline_mode = #tpu.pipeline_mode<synchronous>, transform_indices = @transform_12, window_bounds = array<i64: 1, 4>}, {pipeline_mode = #tpu.pipeline_mode<synchronous>, transform_indices = @transform_13, window_bounds = array<i64: 8, 4>}, {pipeline_mode = #tpu.pipeline_mode<synchronous>, transform_indices = @transform_14, window_bounds = array<i64: 8, 4>}, {transform_indices = @transform_15, window_bounds = array<i64: 4, 32, 32>}, {pipeline_mode = #tpu.pipeline_mode<synchronous>, transform_indices = @transform_16, window_bounds = array<i64: 32, 32>}, {pipeline_mode = #tpu.pipeline_mode<synchronous>, transform_indices = @transform_17, window_bounds = array<i64: 8, 32>}]} {
    %c0_i32 = arith.constant 0 : i32
    %0 = arith.cmpi eq, %arg0, %c0_i32 : i32
    %1 = arith.extui %0 : i1 to i32
    %c0_i32_0 = arith.constant 0 : i32
    %2 = arith.cmpi ne, %1, %c0_i32_0 : i32
    scf.if %2 {
      %c0_32 = arith.constant 0 : index
      %c0_33 = arith.constant 0 : index
      %70 = vector.load %arg1[%c0_32, %c0_33] : memref<8x32xf32, #tpu.memory_space<vmem>>, vector<8x32xf32>
      %c0_34 = arith.constant 0 : index
      %c0_35 = arith.constant 0 : index
      %71 = vector.load %arg2[%c0_34, %c0_35] : memref<32x8xf32, #tpu.memory_space<vmem>>, vector<32x8xf32>
      %cst_36 = arith.constant dense<0.000000e+00> : vector<8x8xf32>
      %72 = tpu.matmul %70, %71, %cst_36 {dimension_numbers = #tpu.dot_dimension_numbers<[1], [0], [0], [1], [0, 0, 1, 1], [], []>} : vector<8x32xf32>, vector<32x8xf32>, vector<8x8xf32> -> vector<8x8xf32>
      %c0_37 = arith.constant 0 : index
      %c0_38 = arith.constant 0 : index
      %73 = vector.load %arg3[%c0_37, %c0_38] : memref<1x8xf32, #tpu.memory_space<vmem>>, vector<1x8xf32>
      %74 = vector.broadcast %73 : vector<1x8xf32> to vector<8x8xf32>
      %75 = arith.addf %72, %74 : vector<8x8xf32>
      %cst_39 = arith.constant 0.000000e+00 : f32
      %76 = vector.broadcast %cst_39 : f32 to vector<8x8xf32>
      %77 = arith.maximumf %75, %76 : vector<8x8xf32>
      %c0_40 = arith.constant 0 : index
      %c0_41 = arith.constant 0 : index
      %78 = vector.load %arg4[%c0_40, %c0_41] : memref<8x4xf32, #tpu.memory_space<vmem>>, vector<8x4xf32>
      %cst_42 = arith.constant dense<0.000000e+00> : vector<8x4xf32>
      %79 = tpu.matmul %77, %78, %cst_42 {dimension_numbers = #tpu.dot_dimension_numbers<[1], [0], [0], [1], [0, 0, 1, 1], [], []>} : vector<8x8xf32>, vector<8x4xf32>, vector<8x4xf32> -> vector<8x4xf32>
      %c0_43 = arith.constant 0 : index
      %c0_44 = arith.constant 0 : index
      %80 = vector.load %arg5[%c0_43, %c0_44] : memref<1x4xf32, #tpu.memory_space<vmem>>, vector<1x4xf32>
      %81 = vector.broadcast %80 : vector<1x4xf32> to vector<8x4xf32>
      %82 = arith.addf %79, %81 : vector<8x4xf32>
      %c0_45 = arith.constant 0 : index
      %c0_46 = arith.constant 0 : index
      %83 = vector.load %arg6[%c0_45, %c0_46] : memref<32x8xf32, #tpu.memory_space<vmem>>, vector<32x8xf32>
      %cst_47 = arith.constant dense<0.000000e+00> : vector<8x8xf32>
      %84 = tpu.matmul %70, %83, %cst_47 {dimension_numbers = #tpu.dot_dimension_numbers<[1], [0], [0], [1], [0, 0, 1, 1], [], []>} : vector<8x32xf32>, vector<32x8xf32>, vector<8x8xf32> -> vector<8x8xf32>
      %c0_48 = arith.constant 0 : index
      %c0_49 = arith.constant 0 : index
      %85 = vector.load %arg7[%c0_48, %c0_49] : memref<1x8xf32, #tpu.memory_space<vmem>>, vector<1x8xf32>
      %86 = vector.broadcast %85 : vector<1x8xf32> to vector<8x8xf32>
      %87 = arith.addf %84, %86 : vector<8x8xf32>
      %cst_50 = arith.constant 0.000000e+00 : f32
      %88 = vector.broadcast %cst_50 : f32 to vector<8x8xf32>
      %89 = arith.maximumf %87, %88 : vector<8x8xf32>
      %c0_51 = arith.constant 0 : index
      %c0_52 = arith.constant 0 : index
      %90 = vector.load %arg8[%c0_51, %c0_52] : memref<8x4xf32, #tpu.memory_space<vmem>>, vector<8x4xf32>
      %cst_53 = arith.constant dense<0.000000e+00> : vector<8x4xf32>
      %91 = tpu.matmul %89, %90, %cst_53 {dimension_numbers = #tpu.dot_dimension_numbers<[1], [0], [0], [1], [0, 0, 1, 1], [], []>} : vector<8x8xf32>, vector<8x4xf32>, vector<8x4xf32> -> vector<8x4xf32>
      %c0_54 = arith.constant 0 : index
      %c0_55 = arith.constant 0 : index
      %92 = vector.load %arg9[%c0_54, %c0_55] : memref<1x4xf32, #tpu.memory_space<vmem>>, vector<1x4xf32>
      %93 = vector.broadcast %92 : vector<1x4xf32> to vector<8x4xf32>
      %94 = arith.addf %91, %93 : vector<8x4xf32>
      %cst_56 = arith.constant -8.000000e+00 : f32
      %cst_57 = arith.constant 2.000000e+00 : f32
      %95 = vector.broadcast %cst_56 : f32 to vector<8x4xf32>
      %96 = arith.maximumf %95, %94 : vector<8x4xf32>
      %97 = vector.broadcast %cst_57 : f32 to vector<8x4xf32>
      %98 = arith.minimumf %97, %96 : vector<8x4xf32>
      %c0_58 = arith.constant 0 : index
      %c0_59 = arith.constant 0 : index
      %99 = vector.load %arg10[%c0_58, %c0_59] : memref<32x8xf32, #tpu.memory_space<vmem>>, vector<32x8xf32>
      %cst_60 = arith.constant dense<0.000000e+00> : vector<8x8xf32>
      %100 = tpu.matmul %70, %99, %cst_60 {dimension_numbers = #tpu.dot_dimension_numbers<[1], [0], [0], [1], [0, 0, 1, 1], [], []>} : vector<8x32xf32>, vector<32x8xf32>, vector<8x8xf32> -> vector<8x8xf32>
      %c0_61 = arith.constant 0 : index
      %c0_62 = arith.constant 0 : index
      %101 = vector.load %arg11[%c0_61, %c0_62] : memref<1x8xf32, #tpu.memory_space<vmem>>, vector<1x8xf32>
      %102 = vector.broadcast %101 : vector<1x8xf32> to vector<8x8xf32>
      %103 = arith.addf %100, %102 : vector<8x8xf32>
      %cst_63 = arith.constant 0.000000e+00 : f32
      %104 = vector.broadcast %cst_63 : f32 to vector<8x8xf32>
      %105 = arith.maximumf %103, %104 : vector<8x8xf32>
      %c0_64 = arith.constant 0 : index
      %c0_65 = arith.constant 0 : index
      %106 = vector.load %arg12[%c0_64, %c0_65] : memref<8x4xf32, #tpu.memory_space<vmem>>, vector<8x4xf32>
      %cst_66 = arith.constant dense<0.000000e+00> : vector<8x4xf32>
      %107 = tpu.matmul %105, %106, %cst_66 {dimension_numbers = #tpu.dot_dimension_numbers<[1], [0], [0], [1], [0, 0, 1, 1], [], []>} : vector<8x8xf32>, vector<8x4xf32>, vector<8x4xf32> -> vector<8x4xf32>
      %c0_67 = arith.constant 0 : index
      %c0_68 = arith.constant 0 : index
      %108 = vector.load %arg13[%c0_67, %c0_68] : memref<1x4xf32, #tpu.memory_space<vmem>>, vector<1x4xf32>
      %109 = vector.broadcast %108 : vector<1x4xf32> to vector<8x4xf32>
      %110 = arith.addf %107, %109 : vector<8x4xf32>
      %cst_69 = arith.constant 5.000000e-01 : f32
      %111 = vector.broadcast %cst_69 : f32 to vector<8x4xf32>
      %112 = arith.mulf %111, %98 : vector<8x4xf32>
      %113 = math.exp %112 : vector<8x4xf32>
      %c0_70 = arith.constant 0 : index
      %c0_71 = arith.constant 0 : index
      %114 = vector.load %arg14[%c0_70, %c0_71] : memref<8x4xf32, #tpu.memory_space<vmem>>, vector<8x4xf32>
      %115 = arith.mulf %114, %113 : vector<8x4xf32>
      %116 = arith.addf %82, %115 : vector<8x4xf32>
      %c0_72 = arith.constant 0 : index
      %c0_73 = arith.constant 0 : index
      %117 = vector.load %arg15[%c0_72, %c0_73] : memref<8x4xf32, #tpu.memory_space<vmem>>, vector<8x4xf32>
      %118 = arith.addf %110, %117 : vector<8x4xf32>
      %cst_74 = arith.constant 1.000000e+01 : f32
      %119 = vector.broadcast %cst_74 : f32 to vector<8x4xf32>
      %120 = arith.mulf %118, %119 : vector<8x4xf32>
      %121 = arith.negf %120 : vector<8x4xf32>
      %122 = math.exp %121 : vector<8x4xf32>
      %cst_75 = arith.constant 1.000000e+00 : f32
      %123 = vector.broadcast %cst_75 : f32 to vector<8x4xf32>
      %124 = arith.addf %123, %122 : vector<8x4xf32>
      %125 = arith.divf %123, %124 : vector<8x4xf32>
      %126 = arith.mulf %116, %125 : vector<8x4xf32>
      %c0_76 = arith.constant 0 : index
      %c0_77 = arith.constant 0 : index
      %127 = vector.load %arg19[%c0_76, %c0_77] : memref<8x4xf32, #tpu.memory_space<vmem>>, vector<8x4xf32>
      tpu.vector_store %arg19[%c0_76, %c0_77], %126 {strides = array<i32>} : memref<8x4xf32, #tpu.memory_space<vmem>>, vector<8x4xf32>,
      %c0_78 = arith.constant 0 : index
      %c0_79 = arith.constant 0 : index
      %128 = vector.load %arg20[%c0_78, %c0_79] : memref<8x32xf32, #tpu.memory_space<vmem>>, vector<8x32xf32>
      tpu.vector_store %arg20[%c0_78, %c0_79], %70 {strides = array<i32>} : memref<8x32xf32, #tpu.memory_space<vmem>>, vector<8x32xf32>,
    } else {
    }
    %c0 = arith.constant 0 : index
    %c0_1 = arith.constant 0 : index
    %3 = vector.load %arg19[%c0, %c0_1] : memref<8x4xf32, #tpu.memory_space<vmem>>, vector<8x4xf32>
    %4 = tpu.iota {dimensions = array<i32: 1>} : vector<8x4xi32>
    %c0_2 = arith.constant 0 : index
    %c0_3 = arith.constant 0 : index
    %5 = vector.load %arg20[%c0_2, %c0_3] : memref<8x32xf32, #tpu.memory_space<vmem>>, vector<8x32xf32>
    %c4_i32 = arith.constant 4 : i32
    %6 = arith.muli %arg0, %c4_i32 : i32
    %c0_i32_4 = arith.constant 0 : i32
    %7 = arith.addi %6, %c0_i32_4 : i32
    %8 = vector.broadcast %7 : i32 to vector<8x4xi32>
    %9 = arith.cmpi eq, %4, %8 : vector<8x4xi32>
    %cst = arith.constant 0.000000e+00 : f32
    %10 = vector.broadcast %cst : f32 to vector<8x4xf32>
    %11 = arith.select %9, %3, %10 : vector<8x4xi1>, vector<8x4xf32>
    %cst_5 = arith.constant dense<0.000000e+00> : vector<8xf32>
    %12 = vector.multi_reduction <add>, %11, %cst_5 [1] : vector<8x4xf32> to vector<8xf32>
    %13 = vector.shape_cast %12 : vector<8xf32> to vector<8x1xf32>
    %14 = arith.truncf %5 : vector<8x32xf32> to vector<8x32xbf16>
    %c0_6 = arith.constant 0 : index
    %c0_7 = arith.constant 0 : index
    %c0_8 = arith.constant 0 : index
    %15 = vector.load %arg16[%c0_6, %c0_7, %c0_8] : memref<4x32x32xbf16, #tpu.memory_space<vmem>>, vector<1x32x32xbf16>
    %16 = vector.shape_cast %15 : vector<1x32x32xbf16> to vector<32x32xbf16>
    %cst_9 = arith.constant dense<0.000000e+00> : vector<8x32xf32>
    %17 = tpu.matmul %14, %16, %cst_9 {dimension_numbers = #tpu.dot_dimension_numbers<[1], [0], [0], [1], [0, 0, 1, 1], [], []>} : vector<8x32xbf16>, vector<32x32xbf16>, vector<8x32xf32> -> vector<8x32xf32>
    %18 = vector.broadcast %13 : vector<8x1xf32> to vector<8x32xf32>
    %19 = arith.mulf %18, %17 : vector<8x32xf32>
    %20 = arith.addf %5, %19 : vector<8x32xf32>
    %c4_i32_10 = arith.constant 4 : i32
    %21 = arith.muli %arg0, %c4_i32_10 : i32
    %c1_i32 = arith.constant 1 : i32
    %22 = arith.addi %21, %c1_i32 : i32
    %23 = vector.broadcast %22 : i32 to vector<8x4xi32>
    %24 = arith.cmpi eq, %4, %23 : vector<8x4xi32>
    %cst_11 = arith.constant 0.000000e+00 : f32
    %25 = vector.broadcast %cst_11 : f32 to vector<8x4xf32>
    %26 = arith.select %24, %3, %25 : vector<8x4xi1>, vector<8x4xf32>
    %cst_12 = arith.constant dense<0.000000e+00> : vector<8xf32>
    %27 = vector.multi_reduction <add>, %26, %cst_12 [1] : vector<8x4xf32> to vector<8xf32>
    %28 = vector.shape_cast %27 : vector<8xf32> to vector<8x1xf32>
    %29 = arith.truncf %20 : vector<8x32xf32> to vector<8x32xbf16>
    %c1 = arith.constant 1 : index
    %c0_13 = arith.constant 0 : index
    %c0_14 = arith.constant 0 : index
    %30 = vector.load %arg16[%c1, %c0_13, %c0_14] : memref<4x32x32xbf16, #tpu.memory_space<vmem>>, vector<1x32x32xbf16>
    %31 = vector.shape_cast %30 : vector<1x32x32xbf16> to vector<32x32xbf16>
    %cst_15 = arith.constant dense<0.000000e+00> : vector<8x32xf32>
    %32 = tpu.matmul %29, %31, %cst_15 {dimension_numbers = #tpu.dot_dimension_numbers<[1], [0], [0], [1], [0, 0, 1, 1], [], []>} : vector<8x32xbf16>, vector<32x32xbf16>, vector<8x32xf32> -> vector<8x32xf32>
    %33 = vector.broadcast %28 : vector<8x1xf32> to vector<8x32xf32>
    %34 = arith.mulf %33, %32 : vector<8x32xf32>
    %35 = arith.addf %20, %34 : vector<8x32xf32>
    %c4_i32_16 = arith.constant 4 : i32
    %36 = arith.muli %arg0, %c4_i32_16 : i32
    %c2_i32 = arith.constant 2 : i32
    %37 = arith.addi %36, %c2_i32 : i32
    %38 = vector.broadcast %37 : i32 to vector<8x4xi32>
    %39 = arith.cmpi eq, %4, %38 : vector<8x4xi32>
    %cst_17 = arith.constant 0.000000e+00 : f32
    %40 = vector.broadcast %cst_17 : f32 to vector<8x4xf32>
    %41 = arith.select %39, %3, %40 : vector<8x4xi1>, vector<8x4xf32>
    %cst_18 = arith.constant dense<0.000000e+00> : vector<8xf32>
    %42 = vector.multi_reduction <add>, %41, %cst_18 [1] : vector<8x4xf32> to vector<8xf32>
    %43 = vector.shape_cast %42 : vector<8xf32> to vector<8x1xf32>
    %44 = arith.truncf %35 : vector<8x32xf32> to vector<8x32xbf16>
    %c2 = arith.constant 2 : index
    %c0_19 = arith.constant 0 : index
    %c0_20 = arith.constant 0 : index
    %45 = vector.load %arg16[%c2, %c0_19, %c0_20] : memref<4x32x32xbf16, #tpu.memory_space<vmem>>, vector<1x32x32xbf16>
    %46 = vector.shape_cast %45 : vector<1x32x32xbf16> to vector<32x32xbf16>
    %cst_21 = arith.constant dense<0.000000e+00> : vector<8x32xf32>
    %47 = tpu.matmul %44, %46, %cst_21 {dimension_numbers = #tpu.dot_dimension_numbers<[1], [0], [0], [1], [0, 0, 1, 1], [], []>} : vector<8x32xbf16>, vector<32x32xbf16>, vector<8x32xf32> -> vector<8x32xf32>
    %48 = vector.broadcast %43 : vector<8x1xf32> to vector<8x32xf32>
    %49 = arith.mulf %48, %47 : vector<8x32xf32>
    %50 = arith.addf %35, %49 : vector<8x32xf32>
    %c4_i32_22 = arith.constant 4 : i32
    %51 = arith.muli %arg0, %c4_i32_22 : i32
    %c3_i32 = arith.constant 3 : i32
    %52 = arith.addi %51, %c3_i32 : i32
    %53 = vector.broadcast %52 : i32 to vector<8x4xi32>
    %54 = arith.cmpi eq, %4, %53 : vector<8x4xi32>
    %cst_23 = arith.constant 0.000000e+00 : f32
    %55 = vector.broadcast %cst_23 : f32 to vector<8x4xf32>
    %56 = arith.select %54, %3, %55 : vector<8x4xi1>, vector<8x4xf32>
    %cst_24 = arith.constant dense<0.000000e+00> : vector<8xf32>
    %57 = vector.multi_reduction <add>, %56, %cst_24 [1] : vector<8x4xf32> to vector<8xf32>
    %58 = vector.shape_cast %57 : vector<8xf32> to vector<8x1xf32>
    %59 = arith.truncf %50 : vector<8x32xf32> to vector<8x32xbf16>
    %c3 = arith.constant 3 : index
    %c0_25 = arith.constant 0 : index
    %c0_26 = arith.constant 0 : index
    %60 = vector.load %arg16[%c3, %c0_25, %c0_26] : memref<4x32x32xbf16, #tpu.memory_space<vmem>>, vector<1x32x32xbf16>
    %61 = vector.shape_cast %60 : vector<1x32x32xbf16> to vector<32x32xbf16>
    %cst_27 = arith.constant dense<0.000000e+00> : vector<8x32xf32>
    %62 = tpu.matmul %59, %61, %cst_27 {dimension_numbers = #tpu.dot_dimension_numbers<[1], [0], [0], [1], [0, 0, 1, 1], [], []>} : vector<8x32xbf16>, vector<32x32xbf16>, vector<8x32xf32> -> vector<8x32xf32>
    %63 = vector.broadcast %58 : vector<8x1xf32> to vector<8x32xf32>
    %64 = arith.mulf %63, %62 : vector<8x32xf32>
    %65 = arith.addf %50, %64 : vector<8x32xf32>
    %c0_28 = arith.constant 0 : index
    %c0_29 = arith.constant 0 : index
    %66 = vector.load %arg20[%c0_28, %c0_29] : memref<8x32xf32, #tpu.memory_space<vmem>>, vector<8x32xf32>
    tpu.vector_store %arg20[%c0_28, %c0_29], %65 {strides = array<i32>} : memref<8x32xf32, #tpu.memory_space<vmem>>, vector<8x32xf32>,
    %c0_i32_30 = arith.constant 0 : i32
    %67 = arith.cmpi eq, %arg0, %c0_i32_30 : i32
    %68 = arith.extui %67 : i1 to i32
    %c0_i32_31 = arith.constant 0 : i32
    %69 = arith.cmpi ne, %68, %c0_i32_31 : i32
    scf.if %69 {
      %70 = arith.truncf %65 : vector<8x32xf32> to vector<8x32xbf16>
      %c0_32 = arith.constant 0 : index
      %c0_33 = arith.constant 0 : index
      %71 = vector.load %arg17[%c0_32, %c0_33] : memref<32x32xbf16, #tpu.memory_space<vmem>>, vector<32x32xbf16>
      %cst_34 = arith.constant dense<0.000000e+00> : vector<8x32xf32>
      %72 = tpu.matmul %70, %71, %cst_34 {dimension_numbers = #tpu.dot_dimension_numbers<[1], [0], [0], [1], [0, 0, 1, 1], [], []>} : vector<8x32xbf16>, vector<32x32xbf16>, vector<8x32xf32> -> vector<8x32xf32>
      %c0_35 = arith.constant 0 : index
      %c0_36 = arith.constant 0 : index
      %73 = vector.load %arg18[%c0_35, %c0_36] : memref<8x32xf32, #tpu.memory_space<vmem>>, vector<8x32xf32>
      tpu.vector_store %arg18[%c0_35, %c0_36], %72 {strides = array<i32>} : memref<8x32xf32, #tpu.memory_space<vmem>>, vector<8x32xf32>,
    } else {
    }
    return
  }
  func.func @transform_0(%arg0: i32) -> (i32, i32) {
    %c0_i32 = arith.constant 0 : i32
    %c0_i32_0 = arith.constant 0 : i32
    %c0_i32_1 = arith.constant 0 : i32
    return %c0_i32, %c0_i32_0 : i32, i32
  }
  func.func @transform_1(%arg0: i32) -> (i32, i32) {
    %c0_i32 = arith.constant 0 : i32
    %c0_i32_0 = arith.constant 0 : i32
    %c0_i32_1 = arith.constant 0 : i32
    return %c0_i32, %c0_i32_0 : i32, i32
  }
  func.func @transform_2(%arg0: i32) -> (i32, i32) {
    %c0_i32 = arith.constant 0 : i32
    %c0_i32_0 = arith.constant 0 : i32
    %c0_i32_1 = arith.constant 0 : i32
    return %c0_i32, %c0_i32_0 : i32, i32
  }
  func.func @transform_3(%arg0: i32) -> (i32, i32) {
    %c0_i32 = arith.constant 0 : i32
    %c0_i32_0 = arith.constant 0 : i32
    %c0_i32_1 = arith.constant 0 : i32
    return %c0_i32, %c0_i32_0 : i32, i32
  }
  func.func @transform_4(%arg0: i32) -> (i32, i32) {
    %c0_i32 = arith.constant 0 : i32
    %c0_i32_0 = arith.constant 0 : i32
    %c0_i32_1 = arith.constant 0 : i32
    return %c0_i32, %c0_i32_0 : i32, i32
  }
  func.func @transform_5(%arg0: i32) -> (i32, i32) {
    %c0_i32 = arith.constant 0 : i32
    %c0_i32_0 = arith.constant 0 : i32
    %c0_i32_1 = arith.constant 0 : i32
    return %c0_i32, %c0_i32_0 : i32, i32
  }
  func.func @transform_6(%arg0: i32) -> (i32, i32) {
    %c0_i32 = arith.constant 0 : i32
    %c0_i32_0 = arith.constant 0 : i32
    %c0_i32_1 = arith.constant 0 : i32
    return %c0_i32, %c0_i32_0 : i32, i32
  }
  func.func @transform_7(%arg0: i32) -> (i32, i32) {
    %c0_i32 = arith.constant 0 : i32
    %c0_i32_0 = arith.constant 0 : i32
    %c0_i32_1 = arith.constant 0 : i32
    return %c0_i32, %c0_i32_0 : i32, i32
  }
  func.func @transform_8(%arg0: i32) -> (i32, i32) {
    %c0_i32 = arith.constant 0 : i32
    %c0_i32_0 = arith.constant 0 : i32
    %c0_i32_1 = arith.constant 0 : i32
    return %c0_i32, %c0_i32_0 : i32, i32
  }
  func.func @transform_9(%arg0: i32) -> (i32, i32) {
    %c0_i32 = arith.constant 0 : i32
    %c0_i32_0 = arith.constant 0 : i32
    %c0_i32_1 = arith.constant 0 : i32
    return %c0_i32, %c0_i32_0 : i32, i32
  }
  func.func @transform_10(%arg0: i32) -> (i32, i32) {
    %c0_i32 = arith.constant 0 : i32
    %c0_i32_0 = arith.constant 0 : i32
    %c0_i32_1 = arith.constant 0 : i32
    return %c0_i32, %c0_i32_0 : i32, i32
  }
  func.func @transform_11(%arg0: i32) -> (i32, i32) {
    %c0_i32 = arith.constant 0 : i32
    %c0_i32_0 = arith.constant 0 : i32
    %c0_i32_1 = arith.constant 0 : i32
    return %c0_i32, %c0_i32_0 : i32, i32
  }
  func.func @transform_12(%arg0: i32) -> (i32, i32) {
    %c0_i32 = arith.constant 0 : i32
    %c0_i32_0 = arith.constant 0 : i32
    %c0_i32_1 = arith.constant 0 : i32
    return %c0_i32, %c0_i32_0 : i32, i32
  }
  func.func @transform_13(%arg0: i32) -> (i32, i32) {
    %c0_i32 = arith.constant 0 : i32
    %c0_i32_0 = arith.constant 0 : i32
    %c0_i32_1 = arith.constant 0 : i32
    return %c0_i32, %c0_i32_0 : i32, i32
  }
  func.func @transform_14(%arg0: i32) -> (i32, i32) {
    %c0_i32 = arith.constant 0 : i32
    %c0_i32_0 = arith.constant 0 : i32
    %c0_i32_1 = arith.constant 0 : i32
    return %c0_i32, %c0_i32_0 : i32, i32
  }
  func.func @transform_15(%arg0: i32) -> (i32, i32, i32) {
    %c0_i32 = arith.constant 0 : i32
    %c0_i32_0 = arith.constant 0 : i32
    %c0_i32_1 = arith.constant 0 : i32
    return %arg0, %c0_i32, %c0_i32_0 : i32, i32, i32
  }
  func.func @transform_16(%arg0: i32) -> (i32, i32) {
    %c0_i32 = arith.constant 0 : i32
    %c0_i32_0 = arith.constant 0 : i32
    %c0_i32_1 = arith.constant 0 : i32
    return %c0_i32, %c0_i32_0 : i32, i32
  }
  func.func @transform_17(%arg0: i32) -> (i32, i32) {
    %c0_i32 = arith.constant 0 : i32
    %c0_i32_0 = arith.constant 0 : i32
    %c0_i32_1 = arith.constant 0 : i32
    return %c0_i32, %c0_i32_0 : i32, i32
  }
}

</mosaic_0001>

<bundles_post_ra>
// kernel: tpu_custom_call.1
= control target key start
LH: loop header
LB: loop body
LE: loop exit
PB: predicated region body
PF: predicated region fallthrough
CT: control target
= control target key end

     0   :  { %s1435_s0 = inlined_call_operand.vmem [shape: f32[8,32], index: 0, kind: input, shape index: {}]   ;;  %s1436_s1 = inlined_call_operand.vmem [shape: f32[32,8], index: 1, kind: input, shape index: {}]   ;;  %s1437_s2 = inlined_call_operand.vmem [shape: f32[1,8], index: 2, kind: input, shape index: {}]   ;;  %s1438_s3 = inlined_call_operand.vmem [shape: f32[8,4], index: 3, kind: input, shape index: {}]   ;;  %s1439_s4 = inlined_call_operand.vmem [shape: f32[1,4], index: 4, kind: input, shape index: {}]   ;;  %s1440_s5 = inlined_call_operand.vmem [shape: f32[32,8], index: 5, kind: input, shape index: {}]   ;;  %s1441_s6 = inlined_call_operand.vmem [shape: f32[1,8], index: 6, kind: input, shape index: {}]   ;;  %s1442_s7 = inlined_call_operand.vmem [shape: f32[8,4], index: 7, kind: input, shape index: {}]   ;;  %s1443_s8 = inlined_call_operand.vmem [shape: f32[1,4], index: 8, kind: input, shape index: {}]   ;;  %s1444_s9 = inlined_call_operand.vmem [shape: f32[32,8], index: 9, kind: input, shape index: {}]   ;;  %s1445_s10 = inlined_call_operand.vmem [shape: f32[1,8], index: 10, kind: input, shape index: {}]   ;;  %s1446_s11 = inlined_call_operand.vmem [shape: f32[8,4], index: 11, kind: input, shape index: {}]   ;;  %s1447_s12 = inlined_call_operand.vmem [shape: f32[1,4], index: 12, kind: input, shape index: {}]   ;;  %s1448_s13 = inlined_call_operand.vmem [shape: f32[8,4], index: 13, kind: input, shape index: {}]   ;;  %s1449_s14 = inlined_call_operand.vmem [shape: f32[8,4], index: 14, kind: input, shape index: {}]   ;;  %s1450_s15 = inlined_call_operand.vmem [shape: bf16[4,32,32], index: 15, kind: input, shape index: {}]   ;;  %s1451_s16 = inlined_call_operand.vmem [shape: bf16[32,32], index: 16, kind: input, shape index: {}]   ;;  %s1452_s17 = inlined_call_operand.hbm [shape: f32[8,32], index: 17, kind: output, shape index: {}]  }
   0x1   :  { %1454 = sst [smem:[#allocation7_spill]] %s1435_s0 }
   0x2   :  { %1455 = sst [smem:[#allocation8_spill]] %s1436_s1 }
   0x3   :  { %s1456_s26 = sld [smem:[#allocation8_spill]]  ;;  %v1168_v3 = vmov 0.0|0.0   ;;  %vm1169_vm0 = vmmov 0   ;;  %v1170_v6 = vmov 0.0   ;;  %s1457_s20 = sld [smem:[#allocation7_spill]]  ;;  %vm74_vm1 = vcmask 261120  }
   0x4   :  { %1106 = vmatprep.subr.bf16.mxu0 %v1168_v3  ;;  %1026 = vmatprep.mubr.msk.f32.mxu0 %vm1169_vm0, %v1170_v6 }
   0x5   :  { %1029 = vmatprep.subr.mxu1 %v1170_v6  ;;  %1031 = vmatprep.mubr.msk.f32.mxu1 %vm1169_vm0, %v1170_v6 }
   0x9   :  { %v63_v0 = vld [vmem:[%s1456_s26] sm:$0xff]  ;;  %v64_v1 = vld [vmem:[%s1456_s26 + $0x8] sm:$0xff]  ;;  %v65_v2 = vld [vmem:[%s1456_s26 + $0x10] sm:$0xff] }
   0xa   :  { %v1107_v4 = vpack.c.bf16 %v64_v1, %v63_v0  ;;  %v66_v5 = vld [vmem:[%s1456_s26 + $0x18] sm:$0xff]  ;;  %v62_v7 = vld [vmem:[%s1457_s20] sm:$0xff] }
   0xb   :  { %577 = vst.msk [vmem:[#allocation3] sm:$0xff] %vm74_vm1, %v62_v7  ;;  %v1110_v8 = vpack.c.bf16 %v66_v5, %v65_v2 }
   0xc   :  { %1108 = vmatpush3.bf16.msra.mxu0 %v1107_v4 }
   0xd   :  { %1109 = vmatprep.subr.bf16.mxu0 %v1168_v3 }
  0x10   :  { %1111 = vmatpush3.bf16.msra.mxu0 %v1110_v8 }
  0x11   :  { %1061 = vmatprep.subr.mxu0 %v1170_v6 }
  0x12   :  { %22 = vsyncpa [#allocation5], 0  ;;  %v149_v9 = vld [vmem:[%s1438_s3] sm:$0xff]  ;;  %v232_v12 = vld [vmem:[%s1440_s5 + $0x8] sm:$0xff]  ;;  %vm157_vm2 = vcmask 64512   ;;  %vm575_vm3 = vcmask 31744  }
  0x13   :  { %1027 = vmatmul.mubr.msk.f32.vlgmr.msra.gmra.mrb[0].mxu0 %vm74_vm1, %v62_v7  ;;  %1030 = vmatpush3.msra.mxu1 %v149_v9  ;;  %v942_v10 = vld [vmem:[%s1437_s2] ss:$0 sm:$0xff]  ;;  %v233_v18 = vld [vmem:[%s1440_s5 + $0x10] sm:$0xff]  ;;  %v234_v19 = vld [vmem:[%s1440_s5 + $0x18] sm:$0xff]  ;;  %s1171_s3 = smov [#allocation4]  }
  0x14   :  { %1063 = vmatprep.mubr.msk.f32.mxu0 %vm1169_vm0, %v1170_v6  ;;  %1112 = vmatprep.subr.bf16.mxu1 %v1168_v3  ;;  %v231_v11 = vld [vmem:[%s1440_s5] sm:$0xff]  ;;  %v1116_v20 = vpack.c.bf16 %v234_v19, %v233_v18  ;;  %v397_v26 = vld [vmem:[%s1444_s9 + $0x8] sm:$0xff]  ;;  %v398_v32 = vld [vmem:[%s1444_s9 + $0x10] sm:$0xff] }
  0x15   :  { %v1113_v16 = vpack.c.bf16 %v232_v12, %v231_v11  ;;  %v313_v21 = vld [vmem:[%s1442_s7] sm:$0xff]  ;;  %v399_v33 = vld [vmem:[%s1444_s9 + $0x18] sm:$0xff]  ;;  %v1129_v50 = vld [vmem:[%s1450_s15 + $0x8] sm:$0xff]   ;;  %v579_v12 = vlaneseq }
  0x16   :  { %v946_v24 = vld [vmem:[%s1441_s6] ss:$0 sm:$0xff]  ;;  %v1122_v34 = vpack.c.bf16 %v399_v33, %v398_v32  ;;  %v1356_v51 = vld [vmem:[#allocation3] sm:$0xff]  ;;  %v1130_v59 = vld [vmem:[%s1450_s15 + $0x10] sm:$0xff]  }
  0x17   :  { %v396_v25 = vld [vmem:[%s1444_s9] sm:$0xff]  ;;  %v590_v52 = vpack.c.bf16 %v1356_v51, %v1356_v51 }
  0x18   :  { %v1119_v30 = vpack.c.bf16 %v397_v26, %v396_v25  ;;  %v478_v35 = vld [vmem:[%s1446_s11] sm:$0xff]  ;;  %s934_s11 = sshll.u32 %s1171_s3, 4  ;;  %s935_s11 = int_to_ptr.vmem [resolvable:$true] %s934_s11 }
  0x19   :  { %1062 = vmatpush3.msra.mxu0 %v478_v35  ;;  %v948_v36 = vld [vmem:[%s1443_s8] ss:$0 sm:$0xff]  ;;  %p1149_p1 = scmp.lt.s32.totalorder %s935_s11, %s935_s11 }
  0x1a   :  { %1066 = vmatprep.subr.bf16.mxu0 %v1170_v6  ;;  %v950_v42 = vld [vmem:[%s1445_s10] ss:$0 sm:$0xff] }
  0x1b   :  { %v1128_v48 = vld [vmem:[%s1450_s15] sm:$0xff]  }
  0x1c   :  { %v944_v53 = vld [vmem:[%s1439_s4] ss:$0 sm:$0xff] }
  0x1d   :  { %v562_v54 = vld [vmem:[%s1448_s13] sm:$0xff] }
  0x1e   :  { %v952_v60 = vld [vmem:[%s1447_s12] ss:$0 sm:$0xff] }
  0x1f   :  { %v565_v62 = vld [vmem:[%s1449_s14] sm:$0xff] }
  0x20   :  { %v1132_v25 = vld [vmem:[%s1450_s15 + $0x20] sm:$0xff]  }
  0xe6   :  { %v144_v13 = vpop.f32.mrb[0].mxu0 }
  0xe7   :  { %v145_v14 = vadd.f32 %v942_v10, %v144_v13  ;;  %v1028_v15 = vpop.f32.mrb[1].mxu0 }
  0xe9   :  { %v148_v17 = vmax.f32 %v145_v14, 0.0  ;;  %v580_v14 = vand.u32 127, %v579_v12 }
  0xeb   :  { %1032 = vmatmul.mubr.msk.f32.vlgmr.msra.gmra.mrb[0].mxu1 %vm157_vm2, %v148_v17  ;;  %vm725_vm4 = vcmp.eq.s32.totalorder %v580_v14, 2  ;;  %vm584_vm5 = vcmp.eq.s32.totalorder %v580_v14, 0  ;;  %vm795_vm6 = vcmp.eq.s32.totalorder %v580_v14, 3  ;;  %vm655_vm7 = vcmp.eq.s32.totalorder %v580_v14, 1 }
  0xec   :  { %1114 = vmatpush3.bf16.msra.mxu1 %v1113_v16  ;;  %1042 = vmatprep.mubr.msk.f32.mxu1 %vm1169_vm0, %v1170_v6 }
  0xed   :  { %1115 = vmatprep.subr.bf16.mxu1 %v1168_v3 }
  0xf0   :  { %1117 = vmatpush3.bf16.msra.mxu1 %v1116_v20 }
  0xf1   :  { %1045 = vmatprep.subr.mxu1 %v1170_v6 }
  0xf3   :  { %1043 = vmatmul.mubr.msk.f32.vlgmr.msra.gmra.mrb[2].mxu1 %vm74_vm1, %v62_v7 }
  0xf4   :  { %1047 = vmatprep.mubr.msk.f32.mxu1 %vm1169_vm0, %v1170_v6  ;;  %1046 = vmatpush3.msra.mxu1 %v313_v21 }
  0xf5   :  { %1118 = vmatprep.subr.bf16.mxu1 %v1168_v3 }
 0x1be   :  { %v227_v22 = vpop.f32.mrb[0].mxu1 }
 0x1bf   :  { %v1033_v23 = vpop.f32.mrb[1].mxu1  ;;  %v228_v56 = vadd.f32 %v944_v53, %v227_v22 }
 0x1c6   :  { %v308_v27 = vpop.f32.mrb[2].mxu1 }
 0x1c7   :  { %v309_v28 = vadd.f32 %v946_v24, %v308_v27  ;;  %v1044_v29 = vpop.f32.mrb[3].mxu1  ;;  %v1131_v24 = vld [vmem:[%s1450_s15 + $0x18] sm:$0xff]  }
 0x1c9   :  { %v312_v31 = vmax.f32 %v309_v28, 0.0 }
 0x1cb   :  { %1048 = vmatmul.mubr.msk.f32.vlgmr.msra.gmra.mrb[4].mxu1 %vm157_vm2, %v312_v31  ;;  %v1134_v31 = vld [vmem:[%s1450_s15 + $0x30] sm:$0xff]  }
 0x1cc   :  { %1120 = vmatpush3.bf16.msra.mxu1 %v1119_v30  ;;  %1058 = vmatprep.mubr.msk.f32.mxu1 %vm1169_vm0, %v1170_v6  ;;  %v1133_v30 = vld [vmem:[%s1450_s15 + $0x28] sm:$0xff]  }
 0x1cd   :  { %1121 = vmatprep.subr.bf16.mxu1 %v1168_v3 }
 0x1d0   :  { %1123 = vmatpush3.bf16.msra.mxu1 %v1122_v34 }
 0x1d1   :  { %1074 = vmatprep.subr.bf16.mxu1 %v1170_v6 }
 0x1d3   :  { %1059 = vmatmul.mubr.msk.f32.vlgmr.msra.gmra.mrb[6].mxu1 %vm74_vm1, %v62_v7 }
 0x1d4   :  { %1078 = vmatprep.mubr.msk.bf16.mxu1 %vm1169_vm0, %v1170_v6  ;;  %1075 = vmatpush3.bf16.msra.mxu1 %v1130_v59 }
 0x1d5   :  { %1076 = vmatprep.subr.bf16.mxu1 %v1170_v6 }
 0x1d8   :  { %1077 = vmatpush3.bf16.msra.mxu1 %v1131_v24 }
 0x1d9   :  { %1090 = vmatprep.subr.bf16.mxu1 %v1170_v6 }
 0x29e   :  { %v390_v37 = vpop.f32.mrb[4].mxu1 }
 0x29f   :  { %v391_v38 = vadd.f32 %v948_v36, %v390_v37  ;;  %v1049_v39 = vpop.f32.mrb[5].mxu1 }
 0x2a1   :  { %v394_v40 = vmax.f32 %v391_v38, -8.0 }
 0x2a3   :  { %v395_v41 = vmin.f32 %v394_v40, 2.0  ;;  %v1135_v40 = vld [vmem:[%s1450_s15 + $0x38] sm:$0xff]  }
 0x2a5   :  { %v559_v43 = vmul.f32 0.5, %v395_v41  ;;  %v1136_v41 = vld [vmem:[%s1451_s16] sm:$0xff]  }
 0x2a6   :  { %v473_v44 = vpop.f32.mrb[6].mxu1 }
 0x2a7   :  { %v560_v45 = vmul.f32 1.442695, %v559_v43  ;;  %v474_v46 = vadd.f32 %v950_v42, %v473_v44  ;;  %v1060_v47 = vpop.f32.mrb[7].mxu1 }
 0x2a9   :  { %1138 = vpow2.f32 %v560_v45  ;;  %v477_v49 = vmax.f32 %v474_v46, 0.0 }
 0x2ab   :  { %1064 = vmatmul.mubr.msk.f32.vlgmr.msra.gmra.mrb[2].mxu0 %vm157_vm2, %v477_v49 }
 0x2ac   :  { %1067 = vmatpush3.bf16.msra.mxu0 %v1128_v48  ;;  %1070 = vmatprep.mubr.msk.bf16.mxu0 %vm1169_vm0, %v1170_v6 }
 0x2ad   :  { %1068 = vmatprep.subr.bf16.mxu0 %v1170_v6 }
 0x2b0   :  { %1069 = vmatpush3.bf16.msra.mxu0 %v1129_v50  ;;  %v1137_v50 = vld [vmem:[%s1451_s16 + $0x8] sm:$0xff]   ;;  %s1144_s16 = scalar_lea.vmem %s935_s11, 128 }
 0x2b1   :  { %1082 = vmatprep.subr.bf16.mxu0 %v1170_v6  ;;  %p1145_p0 = scmp.ne.s32.totalorder %s935_s11, %s1144_s16  ;;  %p1150_p2 = scmp.lt.s32.totalorder %s1144_s16, %s1144_s16 }
 0x2b3   :  { %v1139_v55 = vpop.eup %1138  ;;  %1071 = vmatmul.mubr.msk.bf16.vlgmr.msra.gmra.mrb[4].mxu0 %vm74_vm1, %v590_v52  ;;  %p1151_p3 = por %p1150_p2, %p1149_p1 }
 0x2b4   :  { %v563_v57 = vmul.f32 %v1139_v55, %v562_v54  ;;  %1086 = vmatprep.mubr.msk.bf16.mxu0 %vm1169_vm0, %v1170_v6  ;;  %1083 = vmatpush3.bf16.msra.mxu0 %v1132_v25 }
 0x2b5   :  { %1084 = vmatprep.subr.bf16.mxu0 %v1170_v6  ;;  %p1152_p4 = pnand %p1151_p3, %p1145_p0 }
 0x2b6   :  { %v564_v58 = vadd.f32 %v563_v57, %v228_v56 }
 0x2b8   :  { %1085 = vmatpush3.bf16.msra.mxu0 %v1133_v30 }
 0x2b9   :  { %1098 = vmatprep.subr.bf16.mxu0 %v1170_v6 }
 0x37e   :  { %v555_v61 = vpop.f32.mrb[2].mxu0 }
 0x37f   :  { %v556_v63 = vadd.f32 %v952_v60, %v555_v61  ;;  %v1065_v0 = vpop.f32.mrb[3].mxu0 }
 0x381   :  { %v566_v1 = vadd.f32 %v565_v62, %v556_v63 }
 0x383   :  { %v954_v2 = vmul.f32 -10.0, %v566_v1 }
 0x385   :  { %v569_v3 = vmul.f32 1.442695, %v954_v2 }
 0x386   :  { %v645_v4 = vpop.f32.mrb[4].mxu0 }
 0x387   :  { %1140 = vpow2.f32 %v569_v3  ;;  %v1072_v5 = vpop.f32.mrb[5].mxu0 }
 0x388   :  { %v648_v7 = vpop.f32.mrb[6].mxu0 }
 0x389   :  { %v1073_v8 = vpop.f32.mrb[7].mxu0 }
 0x391   :  { %v1141_v9 = vpop.eup %1140 }
 0x392   :  { %v571_v10 = vadd.f32 1.0, %v1141_v9 }
 0x394   :  { %1142 = vrcp.f32 %v571_v10 }
 0x39e   :  { %v1143_v11 = vpop.eup %1142 }
 0x39f   :  { %v574_v13 = vmul.f32 %v1143_v11, %v564_v58 }
 0x3a1   :  { %576 = vst.msk [vmem:[#allocation2] sm:$0xff] %vm575_vm3, %v574_v13 }
 0x3a8   :  { %v578_v15 = vld [vmem:[#allocation2] sm:$0xff] }
 0x3a9   :  { %v726_v16 = vsel %vm725_vm4, %v578_v15, 0.0  ;;  %v585_v17 = vsel %vm584_vm5, %v578_v15, 0.0  ;;  %v796_v20 = vsel %vm795_vm6, %v578_v15, 0.0  ;;  %v656_v21 = vsel %vm655_vm7, %v578_v15, 0.0 }
 0x3aa   :  { %v727_v18 = vsel %vm575_vm3, %v726_v16, 0.0  ;;  %v587_v19 = vsel %vm575_vm3, %v585_v17, 0.0  ;;  %v797_v22 = vsel %vm575_vm3, %v796_v20, 0.0  ;;  %v657_v23 = vsel %vm575_vm3, %v656_v21, 0.0 }
 0x3ab   :  { %728 = vadd.xlane.f32.xlu1 %v727_v18  ;;  %588 = vadd.xlane.f32.xlu0 %v587_v19 }
 0x3af   :  { %798 = vadd.xlane.f32.xlu1 %v797_v22  ;;  %658 = vadd.xlane.f32.xlu0 %v657_v23 }
 0x438   :  { %v589_v26 = vpop.xlane.xlu0 %588  ;;  %v729_v42 = vpop.xlane.xlu1 %728 }
 0x439   :  { %v651_v27 = vmul.f32 %v645_v4, %v589_v26 }
 0x43b   :  { %v652_v28 = vadd.f32 %v651_v27, %v1356_v51 }
 0x43c   :  { %v659_v32 = vpop.xlane.xlu0 %658  ;;  %v799_v51 = vpop.xlane.xlu1 %798 }
 0x43d   :  { %v660_v29 = vpack.c.bf16 %v652_v28, %v652_v28 }
 0x43f   :  { %1079 = vmatmul.mubr.msk.bf16.vlgmr.msra.gmra.mrb[8].mxu1 %vm74_vm1, %v660_v29 }
 0x440   :  { %1094 = vmatprep.mubr.msk.bf16.mxu1 %vm1169_vm0, %v1170_v6  ;;  %1091 = vmatpush3.bf16.msra.mxu1 %v1134_v31 }
 0x441   :  { %1092 = vmatprep.subr.bf16.mxu1 %v1170_v6 }
 0x444   :  { %1093 = vmatpush3.bf16.msra.mxu1 %v1135_v40 }
 0x512   :  { %v715_v33 = vpop.f32.mrb[8].mxu1 }
 0x513   :  { %v721_v34 = vmul.f32 %v715_v33, %v659_v32  ;;  %v1080_v35 = vpop.f32.mrb[9].mxu1 }
 0x514   :  { %v718_v36 = vpop.f32.mrb[10].mxu1 }
 0x515   :  { %v722_v37 = vadd.f32 %v721_v34, %v652_v28  ;;  %v1081_v38 = vpop.f32.mrb[11].mxu1 }
 0x517   :  { %v730_v39 = vpack.c.bf16 %v722_v37, %v722_v37 }
 0x519   :  { %1087 = vmatmul.mubr.msk.bf16.vlgmr.msra.gmra.mrb[8].mxu0 %vm74_vm1, %v730_v39 }
 0x51a   :  { %1102 = vmatprep.mubr.msk.bf16.mxu0 %vm1169_vm0, %v1170_v6  ;;  %1099 = vmatpush3.bf16.msra.mxu0 %v1136_v41 }
 0x51b   :  { %1100 = vmatprep.subr.bf16.mxu0 %v1170_v6 }
 0x51e   :  { %1101 = vmatpush3.bf16.msra.mxu0 %v1137_v50 }
 0x5ec   :  { %v785_v43 = vpop.f32.mrb[8].mxu0 }
 0x5ed   :  { %v791_v44 = vmul.f32 %v785_v43, %v729_v42  ;;  %v1088_v45 = vpop.f32.mrb[9].mxu0 }
 0x5ee   :  { %v788_v46 = vpop.f32.mrb[10].mxu0 }
 0x5ef   :  { %v792_v47 = vadd.f32 %v791_v44, %v722_v37  ;;  %v1089_v48 = vpop.f32.mrb[11].mxu0 }
 0x5f1   :  { %v800_v49 = vpack.c.bf16 %v792_v47, %v792_v47 }
 0x5f3   :  { %1095 = vmatmul.mubr.msk.bf16.vlgmr.msra.gmra.mrb[12].mxu1 %vm74_vm1, %v800_v49 }
 0x6c6   :  { %v855_v52 = vpop.f32.mrb[12].mxu1 }
 0x6c7   :  { %v861_v53 = vmul.f32 %v855_v52, %v799_v51  ;;  %v1096_v54 = vpop.f32.mrb[13].mxu1 }
 0x6c8   :  { %v858_v6 = vpop.f32.mrb[14].mxu1 }
 0x6c9   :  { %v862_v55 = vadd.f32 %v861_v53, %v792_v47  ;;  %v1097_v56 = vpop.f32.mrb[15].mxu1 }
 0x6cb   :  { %863 = vst.msk [vmem:[#allocation3] sm:$0xff] %vm74_vm1, %v862_v55  ;;  %v867_v57 = vpack.c.bf16 %v862_v55, %v862_v55 }
 0x6cd   :  { %1103 = vmatmul.mubr.msk.bf16.vlgmr.msra.gmra.mrb[12].mxu0 %vm74_vm1, %v867_v57 }
 0x7a0   :  { %v921_v58 = vpop.f32.mrb[12].mxu0 }
 0x7a1   :  { %927 = vst.msk [vmem:[#allocation4] sm:$0xff] %vm74_vm1, %v921_v58  ;;  %v1104_v59 = vpop.f32.mrb[13].mxu0 }
 0x7a2   :  { %v924_v60 = vpop.f32.mrb[14].mxu0 }
 0x7a3   :  { %1155 = shalt.err (!%p1152_p4)
}
 0x7a4   :  { %s1156_s0 = scalar_lea.hbm %s1452_s17, 128 }
 0x7a5   :  { %p1157_p5 = scmp.ne.s32.totalorder %s1452_s17, %s1156_s0  ;;  %p1160_p6 = scmp.lt.u32.totalorder %s1156_s0, %s1452_s17 }
 0x7a7   :  { %p1162_p7 = pnand %p1160_p6, %p1157_p5 }
 0x7a9   :  { %1165 = shalt.err (!%p1162_p7)
}
 0x7aa   :  { %937 = dma.vmem_to_hbm [thread:$0]  %s935_s11, 128, %s1452_s17, [#allocation5]   ;;  %v1105_v61 = vpop.f32.mrb[15].mxu0 }
 0x7ab   :  { %1166 = dma.done.wait [#allocation5], 128  }
 0x7ac   :  { %1167 = vsyncadd [#allocation5], 4294967168 }
 0x7ad   :  { %941 = vsyncpa [#allocation5], 1 }

// kernel: tpu_custom_call.1
= control target key start
LH: loop header
LB: loop body
LE: loop exit
PB: predicated region body
PF: predicated region fallthrough
CT: control target
= control target key end

     0   :  { %s1435_s0 = inlined_call_operand.vmem [shape: f32[8,32], index: 0, kind: input, shape index: {}]   ;;  %s1436_s1 = inlined_call_operand.vmem [shape: f32[32,8], index: 1, kind: input, shape index: {}]   ;;  %s1437_s2 = inlined_call_operand.vmem [shape: f32[1,8], index: 2, kind: input, shape index: {}]   ;;  %s1438_s3 = inlined_call_operand.vmem [shape: f32[8,4], index: 3, kind: input, shape index: {}]   ;;  %s1439_s4 = inlined_call_operand.vmem [shape: f32[1,4], index: 4, kind: input, shape index: {}]   ;;  %s1440_s5 = inlined_call_operand.vmem [shape: f32[32,8], index: 5, kind: input, shape index: {}]   ;;  %s1441_s6 = inlined_call_operand.vmem [shape: f32[1,8], index: 6, kind: input, shape index: {}]   ;;  %s1442_s7 = inlined_call_operand.vmem [shape: f32[8,4], index: 7, kind: input, shape index: {}]   ;;  %s1443_s8 = inlined_call_operand.vmem [shape: f32[1,4], index: 8, kind: input, shape index: {}]   ;;  %s1444_s9 = inlined_call_operand.vmem [shape: f32[32,8], index: 9, kind: input, shape index: {}]   ;;  %s1445_s10 = inlined_call_operand.vmem [shape: f32[1,8], index: 10, kind: input, shape index: {}]   ;;  %s1446_s11 = inlined_call_operand.vmem [shape: f32[8,4], index: 11, kind: input, shape index: {}]   ;;  %s1447_s12 = inlined_call_operand.vmem [shape: f32[1,4], index: 12, kind: input, shape index: {}]   ;;  %s1448_s13 = inlined_call_operand.vmem [shape: f32[8,4], index: 13, kind: input, shape index: {}]   ;;  %s1449_s14 = inlined_call_operand.vmem [shape: f32[8,4], index: 14, kind: input, shape index: {}]   ;;  %s1450_s15 = inlined_call_operand.vmem [shape: bf16[4,32,32], index: 15, kind: input, shape index: {}]   ;;  %s1451_s16 = inlined_call_operand.vmem [shape: bf16[32,32], index: 16, kind: input, shape index: {}]   ;;  %s1452_s17 = inlined_call_operand.hbm [shape: f32[8,32], index: 17, kind: output, shape index: {}]  }
   0x1   :  { %1454 = sst [smem:[#allocation7_spill]] %s1435_s0 }
   0x2   :  { %1455 = sst [smem:[#allocation8_spill]] %s1436_s1 }
   0x3   :  { %s1456_s26 = sld [smem:[#allocation8_spill]]  ;;  %v1168_v3 = vmov 0.0|0.0   ;;  %vm1169_vm0 = vmmov 0   ;;  %v1170_v6 = vmov 0.0   ;;  %s1457_s20 = sld [smem:[#allocation7_spill]]  ;;  %vm74_vm1 = vcmask 261120  }
   0x4   :  { %1106 = vmatprep.subr.bf16.mxu0 %v1168_v3  ;;  %1026 = vmatprep.mubr.msk.f32.mxu0 %vm1169_vm0, %v1170_v6 }
   0x5   :  { %1029 = vmatprep.subr.mxu1 %v1170_v6  ;;  %1031 = vmatprep.mubr.msk.f32.mxu1 %vm1169_vm0, %v1170_v6 }
   0x9   :  { %v63_v0 = vld [vmem:[%s1456_s26] sm:$0xff]  ;;  %v64_v1 = vld [vmem:[%s1456_s26 + $0x8] sm:$0xff]  ;;  %v65_v2 = vld [vmem:[%s1456_s26 + $0x10] sm:$0xff] }
   0xa   :  { %v1107_v4 = vpack.c.bf16 %v64_v1, %v63_v0  ;;  %v66_v5 = vld [vmem:[%s1456_s26 + $0x18] sm:$0xff]  ;;  %v62_v7 = vld [vmem:[%s1457_s20] sm:$0xff] }
   0xb   :  { %577 = vst.msk [vmem:[#allocation3] sm:$0xff] %vm74_vm1, %v62_v7  ;;  %v1110_v8 = vpack.c.bf16 %v66_v5, %v65_v2 }
   0xc   :  { %1108 = vmatpush3.bf16.msra.mxu0 %v1107_v4 }
   0xd   :  { %1109 = vmatprep.subr.bf16.mxu0 %v1168_v3 }
  0x10   :  { %1111 = vmatpush3.bf16.msra.mxu0 %v1110_v8 }
  0x11   :  { %1061 = vmatprep.subr.mxu0 %v1170_v6 }
  0x12   :  { %22 = vsyncpa [#allocation5], 0  ;;  %v149_v9 = vld [vmem:[%s1438_s3] sm:$0xff]  ;;  %v232_v12 = vld [vmem:[%s1440_s5 + $0x8] sm:$0xff]  ;;  %vm157_vm2 = vcmask 64512   ;;  %vm575_vm3 = vcmask 31744  }
  0x13   :  { %1027 = vmatmul.mubr.msk.f32.vlgmr.msra.gmra.mrb[0].mxu0 %vm74_vm1, %v62_v7  ;;  %1030 = vmatpush3.msra.mxu1 %v149_v9  ;;  %v942_v10 = vld [vmem:[%s1437_s2] ss:$0 sm:$0xff]  ;;  %v233_v18 = vld [vmem:[%s1440_s5 + $0x10] sm:$0xff]  ;;  %v234_v19 = vld [vmem:[%s1440_s5 + $0x18] sm:$0xff]  ;;  %s1171_s3 = smov [#allocation4]  }
  0x14   :  { %1063 = vmatprep.mubr.msk.f32.mxu0 %vm1169_vm0, %v1170_v6  ;;  %1112 = vmatprep.subr.bf16.mxu1 %v1168_v3  ;;  %v231_v11 = vld [vmem:[%s1440_s5] sm:$0xff]  ;;  %v1116_v20 = vpack.c.bf16 %v234_v19, %v233_v18  ;;  %v397_v26 = vld [vmem:[%s1444_s9 + $0x8] sm:$0xff]  ;;  %v398_v32 = vld [vmem:[%s1444_s9 + $0x10] sm:$0xff] }
  0x15   :  { %v1113_v16 = vpack.c.bf16 %v232_v12, %v231_v11  ;;  %v313_v21 = vld [vmem:[%s1442_s7] sm:$0xff]  ;;  %v399_v33 = vld [vmem:[%s1444_s9 + $0x18] sm:$0xff]  ;;  %v1129_v50 = vld [vmem:[%s1450_s15 + $0x8] sm:$0xff]   ;;  %v579_v12 = vlaneseq }
  0x16   :  { %v946_v24 = vld [vmem:[%s1441_s6] ss:$0 sm:$0xff]  ;;  %v1122_v34 = vpack.c.bf16 %v399_v33, %v398_v32  ;;  %v1356_v51 = vld [vmem:[#allocation3] sm:$0xff]  ;;  %v1130_v59 = vld [vmem:[%s1450_s15 + $0x10] sm:$0xff]  }
  0x17   :  { %v396_v25 = vld [vmem:[%s1444_s9] sm:$0xff]  ;;  %v590_v52 = vpack.c.bf16 %v1356_v51, %v1356_v51 }
  0x18   :  { %v1119_v30 = vpack.c.bf16 %v397_v26, %v396_v25  ;;  %v478_v35 = vld [vmem:[%s1446_s11] sm:$0xff]  ;;  %s934_s11 = sshll.u32 %s1171_s3, 4  ;;  %s935_s11 = int_to_ptr.vmem [resolvable:$true] %s934_s11 }
  0x19   :  { %1062 = vmatpush3.msra.mxu0 %v478_v35  ;;  %v948_v36 = vld [vmem:[%s1443_s8] ss:$0 sm:$0xff]  ;;  %p1149_p1 = scmp.lt.s32.totalorder %s935_s11, %s935_s11 }
  0x1a   :  { %1066 = vmatprep.subr.bf16.mxu0 %v1170_v6  ;;  %v950_v42 = vld [vmem:[%s1445_s10] ss:$0 sm:$0xff] }
  0x1b   :  { %v1128_v48 = vld [vmem:[%s1450_s15] sm:$0xff]  }
  0x1c   :  { %v944_v53 = vld [vmem:[%s1439_s4] ss:$0 sm:$0xff] }
  0x1d   :  { %v562_v54 = vld [vmem:[%s1448_s13] sm:$0xff] }
  0x1e   :  { %v952_v60 = vld [vmem:[%s1447_s12] ss:$0 sm:$0xff] }
  0x1f   :  { %v565_v62 = vld [vmem:[%s1449_s14] sm:$0xff] }
  0x20   :  { %v1132_v25 = vld [vmem:[%s1450_s15 + $0x20] sm:$0xff]  }
  0xe6   :  { %v144_v13 = vpop.f32.mrb[0].mxu0 }
  0xe7   :  { %v145_v14 = vadd.f32 %v942_v10, %v144_v13  ;;  %v1028_v15 = vpop.f32.mrb[1].mxu0 }
  0xe9   :  { %v148_v17 = vmax.f32 %v145_v14, 0.0  ;;  %v580_v14 = vand.u32 127, %v579_v12 }
  0xeb   :  { %1032 = vmatmul.mubr.msk.f32.vlgmr.msra.gmra.mrb[0].mxu1 %vm157_vm2, %v148_v17  ;;  %vm725_vm4 = vcmp.eq.s32.totalorder %v580_v14, 2  ;;  %vm584_vm5 = vcmp.eq.s32.totalorder %v580_v14, 0  ;;  %vm795_vm6 = vcmp.eq.s32.totalorder %v580_v14, 3  ;;  %vm655_vm7 = vcmp.eq.s32.totalorder %v580_v14, 1 }
  0xec   :  { %1114 = vmatpush3.bf16.msra.mxu1 %v1113_v16  ;;  %1042 = vmatprep.mubr.msk.f32.mxu1 %vm1169_vm0, %v1170_v6 }
  0xed   :  { %1115 = vmatprep.subr.bf16.mxu1 %v1168_v3 }
  0xf0   :  { %1117 = vmatpush3.bf16.msra.mxu1 %v1116_v20 }
  0xf1   :  { %1045 = vmatprep.subr.mxu1 %v1170_v6 }
  0xf3   :  { %1043 = vmatmul.mubr.msk.f32.vlgmr.msra.gmra.mrb[2].mxu1 %vm74_vm1, %v62_v7 }
  0xf4   :  { %1047 = vmatprep.mubr.msk.f32.mxu1 %vm1169_vm0, %v1170_v6  ;;  %1046 = vmatpush3.msra.mxu1 %v313_v21 }
  0xf5   :  { %1118 = vmatprep.subr.bf16.mxu1 %v1168_v3 }
 0x1be   :  { %v227_v22 = vpop.f32.mrb[0].mxu1 }
 0x1bf   :  { %v1033_v23 = vpop.f32.mrb[1].mxu1  ;;  %v228_v56 = vadd.f32 %v944_v53, %v227_v22 }
 0x1c6   :  { %v308_v27 = vpop.f32.mrb[2].mxu1 }
 0x1c7   :  { %v309_v28 = vadd.f32 %v946_v24, %v308_v27  ;;  %v1044_v29 = vpop.f32.mrb[3].mxu1  ;;  %v1131_v24 = vld [vmem:[%s1450_s15 + $0x18] sm:$0xff]  }
 0x1c9   :  { %v312_v31 = vmax.f32 %v309_v28, 0.0 }
 0x1cb   :  { %1048 = vmatmul.mubr.msk.f32.vlgmr.msra.gmra.mrb[4].mxu1 %vm157_vm2, %v312_v31  ;;  %v1134_v31 = vld [vmem:[%s1450_s15 + $0x30] sm:$0xff]  }
 0x1cc   :  { %1120 = vmatpush3.bf16.msra.mxu1 %v1119_v30  ;;  %1058 = vmatprep.mubr.msk.f32.mxu1 %vm1169_vm0, %v1170_v6  ;;  %v1133_v30 = vld [vmem:[%s1450_s15 + $0x28] sm:$0xff]  }
 0x1cd   :  { %1121 = vmatprep.subr.bf16.mxu1 %v1168_v3 }
 0x1d0   :  { %1123 = vmatpush3.bf16.msra.mxu1 %v1122_v34 }
 0x1d1   :  { %1074 = vmatprep.subr.bf16.mxu1 %v1170_v6 }
 0x1d3   :  { %1059 = vmatmul.mubr.msk.f32.vlgmr.msra.gmra.mrb[6].mxu1 %vm74_vm1, %v62_v7 }
 0x1d4   :  { %1078 = vmatprep.mubr.msk.bf16.mxu1 %vm1169_vm0, %v1170_v6  ;;  %1075 = vmatpush3.bf16.msra.mxu1 %v1130_v59 }
 0x1d5   :  { %1076 = vmatprep.subr.bf16.mxu1 %v1170_v6 }
 0x1d8   :  { %1077 = vmatpush3.bf16.msra.mxu1 %v1131_v24 }
 0x1d9   :  { %1090 = vmatprep.subr.bf16.mxu1 %v1170_v6 }
 0x29e   :  { %v390_v37 = vpop.f32.mrb[4].mxu1 }
 0x29f   :  { %v391_v38 = vadd.f32 %v948_v36, %v390_v37  ;;  %v1049_v39 = vpop.f32.mrb[5].mxu1 }
 0x2a1   :  { %v394_v40 = vmax.f32 %v391_v38, -8.0 }
 0x2a3   :  { %v395_v41 = vmin.f32 %v394_v40, 2.0  ;;  %v1135_v40 = vld [vmem:[%s1450_s15 + $0x38] sm:$0xff]  }
 0x2a5   :  { %v559_v43 = vmul.f32 0.5, %v395_v41  ;;  %v1136_v41 = vld [vmem:[%s1451_s16] sm:$0xff]  }
 0x2a6   :  { %v473_v44 = vpop.f32.mrb[6].mxu1 }
 0x2a7   :  { %v560_v45 = vmul.f32 1.442695, %v559_v43  ;;  %v474_v46 = vadd.f32 %v950_v42, %v473_v44  ;;  %v1060_v47 = vpop.f32.mrb[7].mxu1 }
 0x2a9   :  { %1138 = vpow2.f32 %v560_v45  ;;  %v477_v49 = vmax.f32 %v474_v46, 0.0 }
 0x2ab   :  { %1064 = vmatmul.mubr.msk.f32.vlgmr.msra.gmra.mrb[2].mxu0 %vm157_vm2, %v477_v49 }
 0x2ac   :  { %1067 = vmatpush3.bf16.msra.mxu0 %v1128_v48  ;;  %1070 = vmatprep.mubr.msk.bf16.mxu0 %vm1169_vm0, %v1170_v6 }
 0x2ad   :  { %1068 = vmatprep.subr.bf16.mxu0 %v1170_v6 }
 0x2b0   :  { %1069 = vmatpush3.bf16.msra.mxu0 %v1129_v50  ;;  %v1137_v50 = vld [vmem:[%s1451_s16 + $0x8] sm:$0xff]   ;;  %s1144_s16 = scalar_lea.vmem %s935_s11, 128 }
 0x2b1   :  { %1082 = vmatprep.subr.bf16.mxu0 %v1170_v6  ;;  %p1145_p0 = scmp.ne.s32.totalorder %s935_s11, %s1144_s16  ;;  %p1150_p2 = scmp.lt.s32.totalorder %s1144_s16, %s1144_s16 }
 0x2b3   :  { %v1139_v55 = vpop.eup %1138  ;;  %1071 = vmatmul.mubr.msk.bf16.vlgmr.msra.gmra.mrb[4].mxu0 %vm74_vm1, %v590_v52  ;;  %p1151_p3 = por %p1150_p2, %p1149_p1 }
 0x2b4   :  { %v563_v57 = vmul.f32 %v1139_v55, %v562_v54  ;;  %1086 = vmatprep.mubr.msk.bf16.mxu0 %vm1169_vm0, %v1170_v6  ;;  %1083 = vmatpush3.bf16.msra.mxu0 %v1132_v25 }
 0x2b5   :  { %1084 = vmatprep.subr.bf16.mxu0 %v1170_v6  ;;  %p1152_p4 = pnand %p1151_p3, %p1145_p0 }
 0x2b6   :  { %v564_v58 = vadd.f32 %v563_v57, %v228_v56 }
 0x2b8   :  { %1085 = vmatpush3.bf16.msra.mxu0 %v1133_v30 }
 0x2b9   :  { %1098 = vmatprep.subr.bf16.mxu0 %v1170_v6 }
 0x37e   :  { %v555_v61 = vpop.f32.mrb[2].mxu0 }
 0x37f   :  { %v556_v63 = vadd.f32 %v952_v60, %v555_v61  ;;  %v1065_v0 = vpop.f32.mrb[3].mxu0 }
 0x381   :  { %v566_v1 = vadd.f32 %v565_v62, %v556_v63 }
 0x383   :  { %v954_v2 = vmul.f32 -10.0, %v566_v1 }
 0x385   :  { %v569_v3 = vmul.f32 1.442695, %v954_v2 }
 0x386   :  { %v645_v4 = vpop.f32.mrb[4].mxu0 }
 0x387   :  { %1140 = vpow2.f32 %v569_v3  ;;  %v1072_v5 = vpop.f32.mrb[5].mxu0 }
 0x388   :  { %v648_v7 = vpop.f32.mrb[6].mxu0 }
 0x389   :  { %v1073_v8 = vpop.f32.mrb[7].mxu0 }
 0x391   :  { %v1141_v9 = vpop.eup %1140 }
 0x392   :  { %v571_v10 = vadd.f32 1.0, %v1141_v9 }
 0x394   :  { %1142 = vrcp.f32 %v571_v10 }
 0x39e   :  { %v1143_v11 = vpop.eup %1142 }
 0x39f   :  { %v574_v13 = vmul.f32 %v1143_v11, %v564_v58 }
 0x3a1   :  { %576 = vst.msk [vmem:[#allocation2] sm:$0xff] %vm575_vm3, %v574_v13 }
 0x3a8   :  { %v578_v15 = vld [vmem:[#allocation2] sm:$0xff] }
 0x3a9   :  { %v726_v16 = vsel %vm725_vm4, %v578_v15, 0.0  ;;  %v585_v17 = vsel %vm584_vm5, %v578_v15, 0.0  ;;  %v796_v20 = vsel %vm795_vm6, %v578_v15, 0.0  ;;  %v656_v21 = vsel %vm655_vm7, %v578_v15, 0.0 }
 0x3aa   :  { %v727_v18 = vsel %vm575_vm3, %v726_v16, 0.0  ;;  %v587_v19 = vsel %vm575_vm3, %v585_v17, 0.0  ;;  %v797_v22 = vsel %vm575_vm3, %v796_v20, 0.0  ;;  %v657_v23 = vsel %vm575_vm3, %v656_v21, 0.0 }
 0x3ab   :  { %728 = vadd.xlane.f32.xlu1 %v727_v18  ;;  %588 = vadd.xlane.f32.xlu0 %v587_v19 }
 0x3af   :  { %798 = vadd.xlane.f32.xlu1 %v797_v22  ;;  %658 = vadd.xlane.f32.xlu0 %v657_v23 }
 0x438   :  { %v589_v26 = vpop.xlane.xlu0 %588  ;;  %v729_v42 = vpop.xlane.xlu1 %728 }
 0x439   :  { %v651_v27 = vmul.f32 %v645_v4, %v589_v26 }
 0x43b   :  { %v652_v28 = vadd.f32 %v651_v27, %v1356_v51 }
 0x43c   :  { %v659_v32 = vpop.xlane.xlu0 %658  ;;  %v799_v51 = vpop.xlane.xlu1 %798 }
 0x43d   :  { %v660_v29 = vpack.c.bf16 %v652_v28, %v652_v28 }
 0x43f   :  { %1079 = vmatmul.mubr.msk.bf16.vlgmr.msra.gmra.mrb[8].mxu1 %vm74_vm1, %v660_v29 }
 0x440   :  { %1094 = vmatprep.mubr.msk.bf16.mxu1 %vm1169_vm0, %v1170_v6  ;;  %1091 = vmatpush3.bf16.msra.mxu1 %v1134_v31 }
 0x441   :  { %1092 = vmatprep.subr.bf16.mxu1 %v1170_v6 }
 0x444   :  { %1093 = vmatpush3.bf16.msra.mxu1 %v1135_v40 }
 0x512   :  { %v715_v33 = vpop.f32.mrb[8].mxu1 }
 0x513   :  { %v721_v34 = vmul.f32 %v715_v33, %v659_v32  ;;  %v1080_v35 = vpop.f32.mrb[9].mxu1 }
 0x514   :  { %v718_v36 = vpop.f32.mrb[10].mxu1 }
 0x515   :  { %v722_v37 = vadd.f32 %v721_v34, %v652_v28  ;;  %v1081_v38 = vpop.f32.mrb[11].mxu1 }
 0x517   :  { %v730_v39 = vpack.c.bf16 %v722_v37, %v722_v37 }
 0x519   :  { %1087 = vmatmul.mubr.msk.bf16.vlgmr.msra.gmra.mrb[8].mxu0 %vm74_vm1, %v730_v39 }
 0x51a   :  { %1102 = vmatprep.mubr.msk.bf16.mxu0 %vm1169_vm0, %v1170_v6  ;;  %1099 = vmatpush3.bf16.msra.mxu0 %v1136_v41 }
 0x51b   :  { %1100 = vmatprep.subr.bf16.mxu0 %v1170_v6 }
 0x51e   :  { %1101 = vmatpush3.bf16.msra.mxu0 %v1137_v50 }
 0x5ec   :  { %v785_v43 = vpop.f32.mrb[8].mxu0 }
 0x5ed   :  { %v791_v44 = vmul.f32 %v785_v43, %v729_v42  ;;  %v1088_v45 = vpop.f32.mrb[9].mxu0 }
 0x5ee   :  { %v788_v46 = vpop.f32.mrb[10].mxu0 }
 0x5ef   :  { %v792_v47 = vadd.f32 %v791_v44, %v722_v37  ;;  %v1089_v48 = vpop.f32.mrb[11].mxu0 }
 0x5f1   :  { %v800_v49 = vpack.c.bf16 %v792_v47, %v792_v47 }
 0x5f3   :  { %1095 = vmatmul.mubr.msk.bf16.vlgmr.msra.gmra.mrb[12].mxu1 %vm74_vm1, %v800_v49 }
 0x6c6   :  { %v855_v52 = vpop.f32.mrb[12].mxu1 }
 0x6c7   :  { %v861_v53 = vmul.f32 %v855_v52, %v799_v51  ;;  %v1096_v54 = vpop.f32.mrb[13].mxu1 }
 0x6c8   :  { %v858_v6 = vpop.f32.mrb[14].mxu1 }
 0x6c9   :  { %v862_v55 = vadd.f32 %v861_v53, %v792_v47  ;;  %v1097_v56 = vpop.f32.mrb[15].mxu1 }
 0x6cb   :  { %863 = vst.msk [vmem:[#allocation3] sm:$0xff] %vm74_vm1, %v862_v55  ;;  %v867_v57 = vpack.c.bf16 %v862_v55, %v862_v55 }
 0x6cd   :  { %1103 = vmatmul.mubr.msk.bf16.vlgmr.msra.gmra.mrb[12].mxu0 %vm74_vm1, %v867_v57 }
 0x7a0   :  { %v921_v58 = vpop.f32.mrb[12].mxu0 }
 0x7a1   :  { %927 = vst.msk [vmem:[#allocation4] sm:$0xff] %vm74_vm1, %v921_v58  ;;  %v1104_v59 = vpop.f32.mrb[13].mxu0 }
 0x7a2   :  { %v924_v60 = vpop.f32.mrb[14].mxu0 }
 0x7a3   :  { %1155 = shalt.err (!%p1152_p4)
}
 0x7a4   :  { %s1156_s0 = scalar_lea.hbm %s1452_s17, 128 }
 0x7a5   :  { %p1157_p5 = scmp.ne.s32.totalorder %s1452_s17, %s1156_s0  ;;  %p1160_p6 = scmp.lt.u32.totalorder %s1156_s0, %s1452_s17 }
 0x7a7   :  { %p1162_p7 = pnand %p1160_p6, %p1157_p5 }
 0x7a9   :  { %1165 = shalt.err (!%p1162_p7)
}
 0x7aa   :  { %937 = dma.vmem_to_hbm [thread:$0]  %s935_s11, 128, %s1452_s17, [#allocation5]   ;;  %v1105_v61 = vpop.f32.mrb[15].mxu0 }
 0x7ab   :  { %1166 = dma.done.wait [#allocation5], 128  }
 0x7ac   :  { %1167 = vsyncadd [#allocation5], 4294967168 }
 0x7ad   :  { %941 = vsyncpa [#allocation5], 1 }

</bundles_post_ra>
